<compile_context>
chip_gen: v6e
topology: v6e:2x2x1
jax: 0.10.0
libtpu: 0.0.40
codegen_flags: <defaults>
</compile_context>

<pallas_src>
import functools
import numpy as np
import jax
import jax.numpy as jnp
from jax.experimental import pallas as pl
from jax.experimental.pallas import tpu as pltpu


# ---------------------------------------------------------------------------
# Fused Pallas kernel
# ---------------------------------------------------------------------------
def _bi_lstm_fused_kernel(*refs, num_layers, hidden_size, seq_len):
    H, T = hidden_size, seq_len
    n_lstm = num_layers * 3                       # (W2, whh_blk, b_perm) per layer

    x_ref = refs[0]
    lstm_refs = refs[1:1 + n_lstm]
    fcw_ref, fcb_ref, h0_ref, c0_ref = refs[1 + n_lstm:1 + n_lstm + 4]
    out_ref, hT_ref, cT_ref = refs[1 + n_lstm + 4:]

    h0 = h0_ref[...]                              # (2L, H)
    c0 = c0_ref[...]

    def rev_rows(a):                              # static time reversal (T tiny)
        return jnp.concatenate([a[T - 1 - t:T - t, :] for t in range(T)], axis=0)

    xl = x_ref[...]                               # (T, D) row t = x'_t

    for l in range(num_layers):
        w2 = lstm_refs[3 * l][...]                # (2D, 8H) doubled-input x-proj
        whh_blk = lstm_refs[3 * l + 1][...]       # (2H, 8H) block-diag recurrence
        b_perm = lstm_refs[3 * l + 2][...]        # (1, 8H)

        # Hoisted, fused x-projection (one matmul per layer, both directions,
        # bias folded in, backward half already time-reversed by construction).
        x2 = jnp.concatenate([xl, rev_rows(xl)], axis=1)          # (T, 2D)
        gx = jnp.dot(x2, w2, preferred_element_type=jnp.float32) + b_perm  # (T, 8H)

        # Stacked [fwd | bwd] state vectors.
        h_fb = jnp.concatenate([h0[2 * l:2 * l + 1, :],
                                h0[2 * l + 1:2 * l + 2, :]], axis=1)       # (1, 2H)
        c_fb = jnp.concatenate([c0[2 * l:2 * l + 1, :],
                                c0[2 * l + 1:2 * l + 2, :]], axis=1)       # (1, 2H)

        rows = []                                 # rows[t] = [h_f(t) | h_b(T-1-t)]
        for t in range(T):
            gates = (jnp.dot(h_fb, whh_blk, preferred_element_type=jnp.float32)
                     + gx[t:t + 1, :])            # (1, 8H)
            # Gate layout: [i_f,i_b | f_f,f_b | o_f,o_b | g_f,g_b]
            sig = jax.nn.sigmoid(gates[:, 0:6 * H])       # 1 EUP op, 6H lanes
            g_fb = jnp.tanh(gates[:, 6 * H:8 * H])        # 1 EUP op, 2H lanes
            c_fb = sig[:, 2 * H:4 * H] * c_fb + sig[:, 0:2 * H] * g_fb
            h_fb = sig[:, 4 * H:6 * H] * jnp.tanh(c_fb)   # 1 EUP op, 2H lanes
            rows.append(h_fb)

        # Final states (PyTorch layout: forward last step / backward last step).
        hT_ref[2 * l:2 * l + 1, :] = h_fb[:, 0:H]
        hT_ref[2 * l + 1:2 * l + 2, :] = h_fb[:, H:2 * H]
        cT_ref[2 * l:2 * l + 1, :] = c_fb[:, 0:H]
        cT_ref[2 * l + 1:2 * l + 2, :] = c_fb[:, H:2 * H]

        # Layer output in forward time order: row t = [h_f(t) | h_b(t)].
        out_f = jnp.concatenate([rows[t][:, 0:H] for t in range(T)], axis=0)
        out_b = jnp.concatenate([rows[T - 1 - t][:, H:2 * H] for t in range(T)],
                                axis=0)
        xl = jnp.concatenate([out_f, out_b], axis=1)                # (T, 2H)

    # Final Linear + Sigmoid (fc1/relu/softplus are unused in the module forward).
    y = jnp.dot(xl, fcw_ref[...], preferred_element_type=jnp.float32) + fcb_ref[...]
    out_ref[...] = jax.nn.sigmoid(y)


_VMEM = pl.BlockSpec(memory_space=pltpu.MemorySpace.VMEM)


def bi_lstm_forward(x, hidden, cell, lstm_prepped, fc2_prepped,
                    *, num_layers, hidden_size):
    """Fused BI_LSTM forward.  x: (T, D_in); hidden/cell: (2*num_layers, 1, H)."""
    T = x.shape[0]
    H = hidden_size
    L2 = 2 * num_layers
    fcwT, fcb = fc2_prepped
    O = fcwT.shape[1]

    h0 = hidden.reshape(L2, H)
    c0 = cell.reshape(L2, H)

    flat = [x]
    for (w2, whh_blk, b_perm) in lstm_prepped:
        flat += [w2, whh_blk, b_perm]
    flat += [fcwT, fcb, h0, c0]

    kernel = functools.partial(_bi_lstm_fused_kernel,
                               num_layers=num_layers, hidden_size=H, seq_len=T)

    out, hT, cT = pl.pallas_call(
        kernel,
        out_shape=(jax.ShapeDtypeStruct((T, O), jnp.float32),
                   jax.ShapeDtypeStruct((L2, H), jnp.float32),
                   jax.ShapeDtypeStruct((L2, H), jnp.float32)),
        in_specs=[_VMEM] * len(flat),
        out_specs=(_VMEM, _VMEM, _VMEM),
    )(*flat)

    return out, (hT.reshape(L2, 1, H), cT.reshape(L2, 1, H))


# ---------------------------------------------------------------------------
# Parameter setup (PyTorch layout) + one-time prep (fused / permuted weights)
# ---------------------------------------------------------------------------
def init_params(key, input_size, hidden_size, num_layers, output_size):
    H = hidden_size
    k = 1.0 / np.sqrt(H)
    lstm = []
    for l in range(num_layers):
        in_sz = input_size if l == 0 else 2 * H
        for _d in range(2):
            key, k1, k2, k3, k4 = jax.random.split(key, 5)
            w_ih = jax.random.uniform(k1, (4 * H, in_sz), jnp.float32, -k, k)
            w_hh = jax.random.uniform(k2, (4 * H, H), jnp.float32, -k, k)
            b_ih = jax.random.uniform(k3, (4 * H,), jnp.float32, -k, k)
            b_hh = jax.random.uniform(k4, (4 * H,), jnp.float32, -k, k)
            lstm.append((w_ih, w_hh, b_ih, b_hh))
    # fc1 / relu / softplus exist in __init__ but are unused in forward().
    key, k1, k2 = jax.random.split(key, 3)
    kf = 1.0 / np.sqrt(2 * H)
    w_fc2 = jax.random.uniform(k1, (output_size, 2 * H), jnp.float32, -kf, kf)
    b_fc2 = jax.random.uniform(k2, (output_size,), jnp.float32, -kf, kf)
    return lstm, (w_fc2, b_fc2)


def _perm_interleave(wf, wb, H):
    """Permute/interleave gate column blocks.

    wf, wb: (..., 4H) in PyTorch gate order [i, f, g, o] along the last axis.
    Returns (..., 8H) with columns [i_f,i_b | f_f,f_b | o_f,o_b | g_f,g_b].
    """
    i_f, f_f, g_f, o_f = (wf[..., 0:H], wf[..., H:2 * H],
                          wf[..., 2 * H:3 * H], wf[..., 3 * H:4 * H])
    i_b, f_b, g_b, o_b = (wb[..., 0:H], wb[..., H:2 * H],
                          wb[..., 2 * H:3 * H], wb[..., 3 * H:4 * H])
    return jnp.concatenate([i_f, i_b, f_f, f_b, o_f, o_b, g_f, g_b], axis=-1)


def prepare_params(lstm_params, fc2_params, hidden_size, num_layers):
    """One-time weight fusion: doubled-input x-proj W2, block-diag whh, folded bias."""
    H = hidden_size
    prepped = []
    for l in range(num_layers):
        wih_f, whh_f, bih_f, bhh_f = lstm_params[2 * l]
        wih_b, whh_b, bih_b, bhh_b = lstm_params[2 * l + 1]
        D = wih_f.shape[1]

        wih_fT, wih_bT = jnp.transpose(wih_f), jnp.transpose(wih_b)   # (D, 4H)
        whh_fT, whh_bT = jnp.transpose(whh_f), jnp.transpose(whh_b)   # (H, 4H)

        zD = jnp.zeros((D, 4 * H), jnp.float32)
        zH = jnp.zeros((H, 4 * H), jnp.float32)

        # Doubled-input x-projection weight: forward-gate columns read rows [0:D)
        # (forward-time half of X2), backward-gate columns read rows [D:2D)
        # (time-reversed half).
        w2 = _perm_interleave(jnp.concatenate([wih_fT, zD], axis=0),
                              jnp.concatenate([zD, wih_bT], axis=0), H)   # (2D, 8H)

        # Block-diagonal recurrence weight: [hf|hb] @ whh_blk applies whh_f to the
        # forward-gate columns and whh_b to the backward-gate columns.
        whh_blk = _perm_interleave(jnp.concatenate([whh_fT, zH], axis=0),
                                   jnp.concatenate([zH, whh_bT], axis=0), H)  # (2H, 8H)

        b_f = (bih_f + bhh_f)[None, :]
        b_b = (bih_b + bhh_b)[None, :]
        b_perm = _perm_interleave(b_f, b_b, H)                        # (1, 8H)

        prepped.append((w2, whh_blk, b_perm))

    w_fc2, b_fc2 = fc2_params
    return prepped, (jnp.transpose(w_fc2), b_fc2.reshape(1, -1))


# ---------------------------------------------------------------------------
# Pure-JAX reference (for correctness check)
# ---------------------------------------------------------------------------
def ref_forward(x, hidden, cell, lstm_params, fc2_params, num_layers, H):
    def cell_step(h, c, x_t, w_ih, w_hh, b_ih, b_hh):
        gates = x_t @ w_ih.T + h @ w_hh.T + b_ih + b_hh
        i = jax.nn.sigmoid(gates[:, :H])
        f = jax.nn.sigmoid(gates[:, H:2 * H])
        g = jnp.tanh(gates[:, 2 * H:3 * H])
        o = jax.nn.sigmoid(gates[:, 3 * H:])
        c_new = f * c + i * g
        return o * jnp.tanh(c_new), c_new

    layer_in = x
    h_fin, c_fin = [], []
    for l in range(num_layers):
        dir_outs = []
        for d in range(2):
            idx = 2 * l + d
            w_ih, w_hh, b_ih, b_hh = lstm_params[idx]
            h, c = hidden[idx], cell[idx]
            xs = layer_in if d == 0 else layer_in[::-1]
            outs = []
            for t in range(xs.shape[0]):
                h, c = cell_step(h, c, xs[t:t + 1], w_ih, w_hh, b_ih, b_hh)
                outs.append(h)
            out = jnp.concatenate(outs, axis=0)
            if d == 1:
                out = out[::-1]
            dir_outs.append(out)
            h_fin.append(h)
            c_fin.append(c)
        layer_in = jnp.concatenate(dir_outs, axis=-1)
    w_fc2, b_fc2 = fc2_params
    out = jax.nn.sigmoid(layer_in @ w_fc2.T + b_fc2)
    return out, (jnp.stack(h_fin), jnp.stack(c_fin))


# ---------------------------------------------------------------------------
if __name__ == "__main__":
    SEQ, INPUT, HIDDEN, LAYERS, OUTPUT = 8, 16, 32, 2, 4

    key = jax.random.PRNGKey(0)
    key, kx = jax.random.split(key)
    x = jax.random.normal(kx, (SEQ, INPUT), jnp.float32)
    # init_hidden(batch_size=1)
    hidden0 = jnp.zeros((LAYERS * 2, 1, HIDDEN), jnp.float32)
    cell0 = jnp.zeros((LAYERS * 2, 1, HIDDEN), jnp.float32)

    lstm_params, fc2_params = init_params(key, INPUT, HIDDEN, LAYERS, OUTPUT)
    lstm_prepped, fc2_prepped = prepare_params(lstm_params, fc2_params,
                                               HIDDEN, LAYERS)

    fwd = jax.jit(functools.partial(bi_lstm_forward,
                                    num_layers=LAYERS, hidden_size=HIDDEN))
    out, (h_new, c_new) = fwd(x, hidden0, cell0, lstm_prepped, fc2_prepped)
    jax.block_until_ready((out, h_new, c_new))

    ref_out, (ref_h, ref_c) = ref_forward(x, hidden0, cell0,
                                          lstm_params, fc2_params, LAYERS, HIDDEN)

    assert out.shape == (SEQ, OUTPUT)
    assert h_new.shape == (LAYERS * 2, 1, HIDDEN)
    assert c_new.shape == (LAYERS * 2, 1, HIDDEN)
    np.testing.assert_allclose(np.asarray(out), np.asarray(ref_out),
                               rtol=1e-2, atol=1e-2)
    np.testing.assert_allclose(np.asarray(h_new), np.asarray(ref_h),
                               rtol=1e-2, atol=1e-2)
    np.testing.assert_allclose(np.asarray(c_new), np.asarray(ref_c),
                               rtol=1e-2, atol=1e-2)

    print("KERNEL_OK")
</pallas_src>

<mosaic_0001>
module attributes {stable_mosaic.version = 11 : i64} {
  func.func @_bi_lstm_fused_kernel(%arg0: memref<8x16xf32, #tpu.memory_space<vmem>>, %arg1: memref<32x256xf32, #tpu.memory_space<vmem>>, %arg2: memref<64x256xf32, #tpu.memory_space<vmem>>, %arg3: memref<1x256xf32, #tpu.memory_space<vmem>>, %arg4: memref<128x256xf32, #tpu.memory_space<vmem>>, %arg5: memref<64x256xf32, #tpu.memory_space<vmem>>, %arg6: memref<1x256xf32, #tpu.memory_space<vmem>>, %arg7: memref<64x4xf32, #tpu.memory_space<vmem>>, %arg8: memref<1x4xf32, #tpu.memory_space<vmem>>, %arg9: memref<4x32xf32, #tpu.memory_space<vmem>>, %arg10: memref<4x32xf32, #tpu.memory_space<vmem>>, %arg11: memref<8x4xf32, #tpu.memory_space<vmem>>, %arg12: memref<4x32xf32, #tpu.memory_space<vmem>>, %arg13: memref<4x32xf32, #tpu.memory_space<vmem>>) attributes {dimension_semantics = [], scalar_prefetch = 0 : i64, scratch_operands = 0 : i64, tpu.core_type = #tpu.core_type<tc>} {
    %c0 = arith.constant 0 : index
    %c0_0 = arith.constant 0 : index
    %0 = vector.load %arg9[%c0, %c0_0] : memref<4x32xf32, #tpu.memory_space<vmem>>, vector<4x32xf32>
    %c0_1 = arith.constant 0 : index
    %c0_2 = arith.constant 0 : index
    %1 = vector.load %arg10[%c0_1, %c0_2] : memref<4x32xf32, #tpu.memory_space<vmem>>, vector<4x32xf32>
    %c0_3 = arith.constant 0 : index
    %c0_4 = arith.constant 0 : index
    %2 = vector.load %arg0[%c0_3, %c0_4] : memref<8x16xf32, #tpu.memory_space<vmem>>, vector<8x16xf32>
    %c0_5 = arith.constant 0 : index
    %c0_6 = arith.constant 0 : index
    %3 = vector.load %arg1[%c0_5, %c0_6] : memref<32x256xf32, #tpu.memory_space<vmem>>, vector<32x256xf32>
    %c0_7 = arith.constant 0 : index
    %c0_8 = arith.constant 0 : index
    %4 = vector.load %arg2[%c0_7, %c0_8] : memref<64x256xf32, #tpu.memory_space<vmem>>, vector<64x256xf32>
    %c0_9 = arith.constant 0 : index
    %c0_10 = arith.constant 0 : index
    %5 = vector.load %arg3[%c0_9, %c0_10] : memref<1x256xf32, #tpu.memory_space<vmem>>, vector<1x256xf32>
    %6 = vector.extract_strided_slice %2 {offsets = [7, 0], sizes = [1, 16], strides = [1, 1]} : vector<8x16xf32> to vector<1x16xf32>
    %7 = vector.extract_strided_slice %2 {offsets = [6, 0], sizes = [1, 16], strides = [1, 1]} : vector<8x16xf32> to vector<1x16xf32>
    %8 = vector.extract_strided_slice %2 {offsets = [5, 0], sizes = [1, 16], strides = [1, 1]} : vector<8x16xf32> to vector<1x16xf32>
    %9 = vector.extract_strided_slice %2 {offsets = [4, 0], sizes = [1, 16], strides = [1, 1]} : vector<8x16xf32> to vector<1x16xf32>
    %10 = vector.extract_strided_slice %2 {offsets = [3, 0], sizes = [1, 16], strides = [1, 1]} : vector<8x16xf32> to vector<1x16xf32>
    %11 = vector.extract_strided_slice %2 {offsets = [2, 0], sizes = [1, 16], strides = [1, 1]} : vector<8x16xf32> to vector<1x16xf32>
    %12 = vector.extract_strided_slice %2 {offsets = [1, 0], sizes = [1, 16], strides = [1, 1]} : vector<8x16xf32> to vector<1x16xf32>
    %13 = vector.extract_strided_slice %2 {offsets = [0, 0], sizes = [1, 16], strides = [1, 1]} : vector<8x16xf32> to vector<1x16xf32>
    %14 = tpu.concatenate %6, %7, %8, %9, %10, %11, %12, %13 in 0 : vector<1x16xf32>, vector<1x16xf32>, vector<1x16xf32>, vector<1x16xf32>, vector<1x16xf32>, vector<1x16xf32>, vector<1x16xf32>, vector<1x16xf32> -> vector<8x16xf32>
    %15 = tpu.concatenate %2, %14 in 1 : vector<8x16xf32>, vector<8x16xf32> -> vector<8x32xf32>
    %cst = arith.constant dense<0.000000e+00> : vector<8x256xf32>
    %16 = tpu.matmul %15, %3, %cst {dimension_numbers = #tpu.dot_dimension_numbers<[1], [0], [0], [1], [0, 0, 1, 1], [], []>} : vector<8x32xf32>, vector<32x256xf32>, vector<8x256xf32> -> vector<8x256xf32>
    %17 = vector.broadcast %5 : vector<1x256xf32> to vector<8x256xf32>
    %18 = arith.addf %16, %17 : vector<8x256xf32>
    %19 = vector.extract_strided_slice %0 {offsets = [0, 0], sizes = [1, 32], strides = [1, 1]} : vector<4x32xf32> to vector<1x32xf32>
    %20 = vector.extract_strided_slice %0 {offsets = [1, 0], sizes = [1, 32], strides = [1, 1]} : vector<4x32xf32> to vector<1x32xf32>
    %21 = tpu.concatenate %19, %20 in 1 : vector<1x32xf32>, vector<1x32xf32> -> vector<1x64xf32>
    %22 = vector.extract_strided_slice %1 {offsets = [0, 0], sizes = [1, 32], strides = [1, 1]} : vector<4x32xf32> to vector<1x32xf32>
    %23 = vector.extract_strided_slice %1 {offsets = [1, 0], sizes = [1, 32], strides = [1, 1]} : vector<4x32xf32> to vector<1x32xf32>
    %24 = tpu.concatenate %22, %23 in 1 : vector<1x32xf32>, vector<1x32xf32> -> vector<1x64xf32>
    %cst_11 = arith.constant dense<0.000000e+00> : vector<1x256xf32>
    %25 = tpu.matmul %21, %4, %cst_11 {dimension_numbers = #tpu.dot_dimension_numbers<[1], [0], [0], [1], [0, 0, 1, 1], [], []>} : vector<1x64xf32>, vector<64x256xf32>, vector<1x256xf32> -> vector<1x256xf32>
    %26 = vector.extract_strided_slice %18 {offsets = [0, 0], sizes = [1, 256], strides = [1, 1]} : vector<8x256xf32> to vector<1x256xf32>
    %27 = arith.addf %25, %26 : vector<1x256xf32>
    %28 = vector.extract_strided_slice %27 {offsets = [0, 0], sizes = [1, 192], strides = [1, 1]} : vector<1x256xf32> to vector<1x192xf32>
    %29 = arith.negf %28 : vector<1x192xf32>
    %30 = math.exp %29 : vector<1x192xf32>
    %cst_12 = arith.constant 1.000000e+00 : f32
    %31 = vector.broadcast %cst_12 : f32 to vector<1x192xf32>
    %32 = arith.addf %31, %30 : vector<1x192xf32>
    %33 = arith.divf %31, %32 : vector<1x192xf32>
    %34 = vector.extract_strided_slice %27 {offsets = [0, 192], sizes = [1, 64], strides = [1, 1]} : vector<1x256xf32> to vector<1x64xf32>
    %35 = math.tanh %34 : vector<1x64xf32>
    %36 = vector.extract_strided_slice %33 {offsets = [0, 64], sizes = [1, 64], strides = [1, 1]} : vector<1x192xf32> to vector<1x64xf32>
    %37 = arith.mulf %36, %24 : vector<1x64xf32>
    %38 = vector.extract_strided_slice %33 {offsets = [0, 0], sizes = [1, 64], strides = [1, 1]} : vector<1x192xf32> to vector<1x64xf32>
    %39 = arith.mulf %38, %35 : vector<1x64xf32>
    %40 = arith.addf %37, %39 : vector<1x64xf32>
    %41 = vector.extract_strided_slice %33 {offsets = [0, 128], sizes = [1, 64], strides = [1, 1]} : vector<1x192xf32> to vector<1x64xf32>
    %42 = math.tanh %40 : vector<1x64xf32>
    %43 = arith.mulf %41, %42 : vector<1x64xf32>
    %cst_13 = arith.constant dense<0.000000e+00> : vector<1x256xf32>
    %44 = tpu.matmul %43, %4, %cst_13 {dimension_numbers = #tpu.dot_dimension_numbers<[1], [0], [0], [1], [0, 0, 1, 1], [], []>} : vector<1x64xf32>, vector<64x256xf32>, vector<1x256xf32> -> vector<1x256xf32>
    %45 = vector.extract_strided_slice %18 {offsets = [1, 0], sizes = [1, 256], strides = [1, 1]} : vector<8x256xf32> to vector<1x256xf32>
    %46 = arith.addf %44, %45 : vector<1x256xf32>
    %47 = vector.extract_strided_slice %46 {offsets = [0, 0], sizes = [1, 192], strides = [1, 1]} : vector<1x256xf32> to vector<1x192xf32>
    %48 = arith.negf %47 : vector<1x192xf32>
    %49 = math.exp %48 : vector<1x192xf32>
    %cst_14 = arith.constant 1.000000e+00 : f32
    %50 = vector.broadcast %cst_14 : f32 to vector<1x192xf32>
    %51 = arith.addf %50, %49 : vector<1x192xf32>
    %52 = arith.divf %50, %51 : vector<1x192xf32>
    %53 = vector.extract_strided_slice %46 {offsets = [0, 192], sizes = [1, 64], strides = [1, 1]} : vector<1x256xf32> to vector<1x64xf32>
    %54 = math.tanh %53 : vector<1x64xf32>
    %55 = vector.extract_strided_slice %52 {offsets = [0, 64], sizes = [1, 64], strides = [1, 1]} : vector<1x192xf32> to vector<1x64xf32>
    %56 = arith.mulf %55, %40 : vector<1x64xf32>
    %57 = vector.extract_strided_slice %52 {offsets = [0, 0], sizes = [1, 64], strides = [1, 1]} : vector<1x192xf32> to vector<1x64xf32>
    %58 = arith.mulf %57, %54 : vector<1x64xf32>
    %59 = arith.addf %56, %58 : vector<1x64xf32>
    %60 = vector.extract_strided_slice %52 {offsets = [0, 128], sizes = [1, 64], strides = [1, 1]} : vector<1x192xf32> to vector<1x64xf32>
    %61 = math.tanh %59 : vector<1x64xf32>
    %62 = arith.mulf %60, %61 : vector<1x64xf32>
    %cst_15 = arith.constant dense<0.000000e+00> : vector<1x256xf32>
    %63 = tpu.matmul %62, %4, %cst_15 {dimension_numbers = #tpu.dot_dimension_numbers<[1], [0], [0], [1], [0, 0, 1, 1], [], []>} : vector<1x64xf32>, vector<64x256xf32>, vector<1x256xf32> -> vector<1x256xf32>
    %64 = vector.extract_strided_slice %18 {offsets = [2, 0], sizes = [1, 256], strides = [1, 1]} : vector<8x256xf32> to vector<1x256xf32>
    %65 = arith.addf %63, %64 : vector<1x256xf32>
    %66 = vector.extract_strided_slice %65 {offsets = [0, 0], sizes = [1, 192], strides = [1, 1]} : vector<1x256xf32> to vector<1x192xf32>
    %67 = arith.negf %66 : vector<1x192xf32>
    %68 = math.exp %67 : vector<1x192xf32>
    %cst_16 = arith.constant 1.000000e+00 : f32
    %69 = vector.broadcast %cst_16 : f32 to vector<1x192xf32>
    %70 = arith.addf %69, %68 : vector<1x192xf32>
    %71 = arith.divf %69, %70 : vector<1x192xf32>
    %72 = vector.extract_strided_slice %65 {offsets = [0, 192], sizes = [1, 64], strides = [1, 1]} : vector<1x256xf32> to vector<1x64xf32>
    %73 = math.tanh %72 : vector<1x64xf32>
    %74 = vector.extract_strided_slice %71 {offsets = [0, 64], sizes = [1, 64], strides = [1, 1]} : vector<1x192xf32> to vector<1x64xf32>
    %75 = arith.mulf %74, %59 : vector<1x64xf32>
    %76 = vector.extract_strided_slice %71 {offsets = [0, 0], sizes = [1, 64], strides = [1, 1]} : vector<1x192xf32> to vector<1x64xf32>
    %77 = arith.mulf %76, %73 : vector<1x64xf32>
    %78 = arith.addf %75, %77 : vector<1x64xf32>
    %79 = vector.extract_strided_slice %71 {offsets = [0, 128], sizes = [1, 64], strides = [1, 1]} : vector<1x192xf32> to vector<1x64xf32>
    %80 = math.tanh %78 : vector<1x64xf32>
    %81 = arith.mulf %79, %80 : vector<1x64xf32>
    %cst_17 = arith.constant dense<0.000000e+00> : vector<1x256xf32>
    %82 = tpu.matmul %81, %4, %cst_17 {dimension_numbers = #tpu.dot_dimension_numbers<[1], [0], [0], [1], [0, 0, 1, 1], [], []>} : vector<1x64xf32>, vector<64x256xf32>, vector<1x256xf32> -> vector<1x256xf32>
    %83 = vector.extract_strided_slice %18 {offsets = [3, 0], sizes = [1, 256], strides = [1, 1]} : vector<8x256xf32> to vector<1x256xf32>
    %84 = arith.addf %82, %83 : vector<1x256xf32>
    %85 = vector.extract_strided_slice %84 {offsets = [0, 0], sizes = [1, 192], strides = [1, 1]} : vector<1x256xf32> to vector<1x192xf32>
    %86 = arith.negf %85 : vector<1x192xf32>
    %87 = math.exp %86 : vector<1x192xf32>
    %cst_18 = arith.constant 1.000000e+00 : f32
    %88 = vector.broadcast %cst_18 : f32 to vector<1x192xf32>
    %89 = arith.addf %88, %87 : vector<1x192xf32>
    %90 = arith.divf %88, %89 : vector<1x192xf32>
    %91 = vector.extract_strided_slice %84 {offsets = [0, 192], sizes = [1, 64], strides = [1, 1]} : vector<1x256xf32> to vector<1x64xf32>
    %92 = math.tanh %91 : vector<1x64xf32>
    %93 = vector.extract_strided_slice %90 {offsets = [0, 64], sizes = [1, 64], strides = [1, 1]} : vector<1x192xf32> to vector<1x64xf32>
    %94 = arith.mulf %93, %78 : vector<1x64xf32>
    %95 = vector.extract_strided_slice %90 {offsets = [0, 0], sizes = [1, 64], strides = [1, 1]} : vector<1x192xf32> to vector<1x64xf32>
    %96 = arith.mulf %95, %92 : vector<1x64xf32>
    %97 = arith.addf %94, %96 : vector<1x64xf32>
    %98 = vector.extract_strided_slice %90 {offsets = [0, 128], sizes = [1, 64], strides = [1, 1]} : vector<1x192xf32> to vector<1x64xf32>
    %99 = math.tanh %97 : vector<1x64xf32>
    %100 = arith.mulf %98, %99 : vector<1x64xf32>
    %cst_19 = arith.constant dense<0.000000e+00> : vector<1x256xf32>
    %101 = tpu.matmul %100, %4, %cst_19 {dimension_numbers = #tpu.dot_dimension_numbers<[1], [0], [0], [1], [0, 0, 1, 1], [], []>} : vector<1x64xf32>, vector<64x256xf32>, vector<1x256xf32> -> vector<1x256xf32>
    %102 = vector.extract_strided_slice %18 {offsets = [4, 0], sizes = [1, 256], strides = [1, 1]} : vector<8x256xf32> to vector<1x256xf32>
    %103 = arith.addf %101, %102 : vector<1x256xf32>
    %104 = vector.extract_strided_slice %103 {offsets = [0, 0], sizes = [1, 192], strides = [1, 1]} : vector<1x256xf32> to vector<1x192xf32>
    %105 = arith.negf %104 : vector<1x192xf32>
    %106 = math.exp %105 : vector<1x192xf32>
    %cst_20 = arith.constant 1.000000e+00 : f32
    %107 = vector.broadcast %cst_20 : f32 to vector<1x192xf32>
    %108 = arith.addf %107, %106 : vector<1x192xf32>
    %109 = arith.divf %107, %108 : vector<1x192xf32>
    %110 = vector.extract_strided_slice %103 {offsets = [0, 192], sizes = [1, 64], strides = [1, 1]} : vector<1x256xf32> to vector<1x64xf32>
    %111 = math.tanh %110 : vector<1x64xf32>
    %112 = vector.extract_strided_slice %109 {offsets = [0, 64], sizes = [1, 64], strides = [1, 1]} : vector<1x192xf32> to vector<1x64xf32>
    %113 = arith.mulf %112, %97 : vector<1x64xf32>
    %114 = vector.extract_strided_slice %109 {offsets = [0, 0], sizes = [1, 64], strides = [1, 1]} : vector<1x192xf32> to vector<1x64xf32>
    %115 = arith.mulf %114, %111 : vector<1x64xf32>
    %116 = arith.addf %113, %115 : vector<1x64xf32>
    %117 = vector.extract_strided_slice %109 {offsets = [0, 128], sizes = [1, 64], strides = [1, 1]} : vector<1x192xf32> to vector<1x64xf32>
    %118 = math.tanh %116 : vector<1x64xf32>
    %119 = arith.mulf %117, %118 : vector<1x64xf32>
    %cst_21 = arith.constant dense<0.000000e+00> : vector<1x256xf32>
    %120 = tpu.matmul %119, %4, %cst_21 {dimension_numbers = #tpu.dot_dimension_numbers<[1], [0], [0], [1], [0, 0, 1, 1], [], []>} : vector<1x64xf32>, vector<64x256xf32>, vector<1x256xf32> -> vector<1x256xf32>
    %121 = vector.extract_strided_slice %18 {offsets = [5, 0], sizes = [1, 256], strides = [1, 1]} : vector<8x256xf32> to vector<1x256xf32>
    %122 = arith.addf %120, %121 : vector<1x256xf32>
    %123 = vector.extract_strided_slice %122 {offsets = [0, 0], sizes = [1, 192], strides = [1, 1]} : vector<1x256xf32> to vector<1x192xf32>
    %124 = arith.negf %123 : vector<1x192xf32>
    %125 = math.exp %124 : vector<1x192xf32>
    %cst_22 = arith.constant 1.000000e+00 : f32
    %126 = vector.broadcast %cst_22 : f32 to vector<1x192xf32>
    %127 = arith.addf %126, %125 : vector<1x192xf32>
    %128 = arith.divf %126, %127 : vector<1x192xf32>
    %129 = vector.extract_strided_slice %122 {offsets = [0, 192], sizes = [1, 64], strides = [1, 1]} : vector<1x256xf32> to vector<1x64xf32>
    %130 = math.tanh %129 : vector<1x64xf32>
    %131 = vector.extract_strided_slice %128 {offsets = [0, 64], sizes = [1, 64], strides = [1, 1]} : vector<1x192xf32> to vector<1x64xf32>
    %132 = arith.mulf %131, %116 : vector<1x64xf32>
    %133 = vector.extract_strided_slice %128 {offsets = [0, 0], sizes = [1, 64], strides = [1, 1]} : vector<1x192xf32> to vector<1x64xf32>
    %134 = arith.mulf %133, %130 : vector<1x64xf32>
    %135 = arith.addf %132, %134 : vector<1x64xf32>
    %136 = vector.extract_strided_slice %128 {offsets = [0, 128], sizes = [1, 64], strides = [1, 1]} : vector<1x192xf32> to vector<1x64xf32>
    %137 = math.tanh %135 : vector<1x64xf32>
    %138 = arith.mulf %136, %137 : vector<1x64xf32>
    %cst_23 = arith.constant dense<0.000000e+00> : vector<1x256xf32>
    %139 = tpu.matmul %138, %4, %cst_23 {dimension_numbers = #tpu.dot_dimension_numbers<[1], [0], [0], [1], [0, 0, 1, 1], [], []>} : vector<1x64xf32>, vector<64x256xf32>, vector<1x256xf32> -> vector<1x256xf32>
    %140 = vector.extract_strided_slice %18 {offsets = [6, 0], sizes = [1, 256], strides = [1, 1]} : vector<8x256xf32> to vector<1x256xf32>
    %141 = arith.addf %139, %140 : vector<1x256xf32>
    %142 = vector.extract_strided_slice %141 {offsets = [0, 0], sizes = [1, 192], strides = [1, 1]} : vector<1x256xf32> to vector<1x192xf32>
    %143 = arith.negf %142 : vector<1x192xf32>
    %144 = math.exp %143 : vector<1x192xf32>
    %cst_24 = arith.constant 1.000000e+00 : f32
    %145 = vector.broadcast %cst_24 : f32 to vector<1x192xf32>
    %146 = arith.addf %145, %144 : vector<1x192xf32>
    %147 = arith.divf %145, %146 : vector<1x192xf32>
    %148 = vector.extract_strided_slice %141 {offsets = [0, 192], sizes = [1, 64], strides = [1, 1]} : vector<1x256xf32> to vector<1x64xf32>
    %149 = math.tanh %148 : vector<1x64xf32>
    %150 = vector.extract_strided_slice %147 {offsets = [0, 64], sizes = [1, 64], strides = [1, 1]} : vector<1x192xf32> to vector<1x64xf32>
    %151 = arith.mulf %150, %135 : vector<1x64xf32>
    %152 = vector.extract_strided_slice %147 {offsets = [0, 0], sizes = [1, 64], strides = [1, 1]} : vector<1x192xf32> to vector<1x64xf32>
    %153 = arith.mulf %152, %149 : vector<1x64xf32>
    %154 = arith.addf %151, %153 : vector<1x64xf32>
    %155 = vector.extract_strided_slice %147 {offsets = [0, 128], sizes = [1, 64], strides = [1, 1]} : vector<1x192xf32> to vector<1x64xf32>
    %156 = math.tanh %154 : vector<1x64xf32>
    %157 = arith.mulf %155, %156 : vector<1x64xf32>
    %cst_25 = arith.constant dense<0.000000e+00> : vector<1x256xf32>
    %158 = tpu.matmul %157, %4, %cst_25 {dimension_numbers = #tpu.dot_dimension_numbers<[1], [0], [0], [1], [0, 0, 1, 1], [], []>} : vector<1x64xf32>, vector<64x256xf32>, vector<1x256xf32> -> vector<1x256xf32>
    %159 = vector.extract_strided_slice %18 {offsets = [7, 0], sizes = [1, 256], strides = [1, 1]} : vector<8x256xf32> to vector<1x256xf32>
    %160 = arith.addf %158, %159 : vector<1x256xf32>
    %161 = vector.extract_strided_slice %160 {offsets = [0, 0], sizes = [1, 192], strides = [1, 1]} : vector<1x256xf32> to vector<1x192xf32>
    %162 = arith.negf %161 : vector<1x192xf32>
    %163 = math.exp %162 : vector<1x192xf32>
    %cst_26 = arith.constant 1.000000e+00 : f32
    %164 = vector.broadcast %cst_26 : f32 to vector<1x192xf32>
    %165 = arith.addf %164, %163 : vector<1x192xf32>
    %166 = arith.divf %164, %165 : vector<1x192xf32>
    %167 = vector.extract_strided_slice %160 {offsets = [0, 192], sizes = [1, 64], strides = [1, 1]} : vector<1x256xf32> to vector<1x64xf32>
    %168 = math.tanh %167 : vector<1x64xf32>
    %169 = vector.extract_strided_slice %166 {offsets = [0, 64], sizes = [1, 64], strides = [1, 1]} : vector<1x192xf32> to vector<1x64xf32>
    %170 = arith.mulf %169, %154 : vector<1x64xf32>
    %171 = vector.extract_strided_slice %166 {offsets = [0, 0], sizes = [1, 64], strides = [1, 1]} : vector<1x192xf32> to vector<1x64xf32>
    %172 = arith.mulf %171, %168 : vector<1x64xf32>
    %173 = arith.addf %170, %172 : vector<1x64xf32>
    %174 = vector.extract_strided_slice %166 {offsets = [0, 128], sizes = [1, 64], strides = [1, 1]} : vector<1x192xf32> to vector<1x64xf32>
    %175 = math.tanh %173 : vector<1x64xf32>
    %176 = arith.mulf %174, %175 : vector<1x64xf32>
    %177 = vector.extract_strided_slice %176 {offsets = [0, 0], sizes = [1, 32], strides = [1, 1]} : vector<1x64xf32> to vector<1x32xf32>
    %c0_27 = arith.constant 0 : index
    %c0_28 = arith.constant 0 : index
    %178 = vector.load %arg12[%c0_27, %c0_28] : memref<4x32xf32, #tpu.memory_space<vmem>>, vector<1x32xf32>
    tpu.vector_store %arg12[%c0_27, %c0_28], %177 {strides = array<i32>} : memref<4x32xf32, #tpu.memory_space<vmem>>, vector<1x32xf32>,
    %179 = vector.extract_strided_slice %176 {offsets = [0, 32], sizes = [1, 32], strides = [1, 1]} : vector<1x64xf32> to vector<1x32xf32>
    %c1 = arith.constant 1 : index
    %c0_29 = arith.constant 0 : index
    %180 = vector.load %arg12[%c1, %c0_29] : memref<4x32xf32, #tpu.memory_space<vmem>>, vector<1x32xf32>
    tpu.vector_store %arg12[%c1, %c0_29], %179 {strides = array<i32>} : memref<4x32xf32, #tpu.memory_space<vmem>>, vector<1x32xf32>,
    %181 = vector.extract_strided_slice %173 {offsets = [0, 0], sizes = [1, 32], strides = [1, 1]} : vector<1x64xf32> to vector<1x32xf32>
    %c0_30 = arith.constant 0 : index
    %c0_31 = arith.constant 0 : index
    %182 = vector.load %arg13[%c0_30, %c0_31] : memref<4x32xf32, #tpu.memory_space<vmem>>, vector<1x32xf32>
    tpu.vector_store %arg13[%c0_30, %c0_31], %181 {strides = array<i32>} : memref<4x32xf32, #tpu.memory_space<vmem>>, vector<1x32xf32>,
    %183 = vector.extract_strided_slice %173 {offsets = [0, 32], sizes = [1, 32], strides = [1, 1]} : vector<1x64xf32> to vector<1x32xf32>
    %c1_32 = arith.constant 1 : index
    %c0_33 = arith.constant 0 : index
    %184 = vector.load %arg13[%c1_32, %c0_33] : memref<4x32xf32, #tpu.memory_space<vmem>>, vector<1x32xf32>
    tpu.vector_store %arg13[%c1_32, %c0_33], %183 {strides = array<i32>} : memref<4x32xf32, #tpu.memory_space<vmem>>, vector<1x32xf32>,
    %185 = vector.extract_strided_slice %43 {offsets = [0, 0], sizes = [1, 32], strides = [1, 1]} : vector<1x64xf32> to vector<1x32xf32>
    %186 = vector.extract_strided_slice %62 {offsets = [0, 0], sizes = [1, 32], strides = [1, 1]} : vector<1x64xf32> to vector<1x32xf32>
    %187 = vector.extract_strided_slice %81 {offsets = [0, 0], sizes = [1, 32], strides = [1, 1]} : vector<1x64xf32> to vector<1x32xf32>
    %188 = vector.extract_strided_slice %100 {offsets = [0, 0], sizes = [1, 32], strides = [1, 1]} : vector<1x64xf32> to vector<1x32xf32>
    %189 = vector.extract_strided_slice %119 {offsets = [0, 0], sizes = [1, 32], strides = [1, 1]} : vector<1x64xf32> to vector<1x32xf32>
    %190 = vector.extract_strided_slice %138 {offsets = [0, 0], sizes = [1, 32], strides = [1, 1]} : vector<1x64xf32> to vector<1x32xf32>
    %191 = vector.extract_strided_slice %157 {offsets = [0, 0], sizes = [1, 32], strides = [1, 1]} : vector<1x64xf32> to vector<1x32xf32>
    %192 = vector.extract_strided_slice %176 {offsets = [0, 0], sizes = [1, 32], strides = [1, 1]} : vector<1x64xf32> to vector<1x32xf32>
    %193 = tpu.concatenate %185, %186, %187, %188, %189, %190, %191, %192 in 0 : vector<1x32xf32>, vector<1x32xf32>, vector<1x32xf32>, vector<1x32xf32>, vector<1x32xf32>, vector<1x32xf32>, vector<1x32xf32>, vector<1x32xf32> -> vector<8x32xf32>
    %194 = vector.extract_strided_slice %176 {offsets = [0, 32], sizes = [1, 32], strides = [1, 1]} : vector<1x64xf32> to vector<1x32xf32>
    %195 = vector.extract_strided_slice %157 {offsets = [0, 32], sizes = [1, 32], strides = [1, 1]} : vector<1x64xf32> to vector<1x32xf32>
    %196 = vector.extract_strided_slice %138 {offsets = [0, 32], sizes = [1, 32], strides = [1, 1]} : vector<1x64xf32> to vector<1x32xf32>
    %197 = vector.extract_strided_slice %119 {offsets = [0, 32], sizes = [1, 32], strides = [1, 1]} : vector<1x64xf32> to vector<1x32xf32>
    %198 = vector.extract_strided_slice %100 {offsets = [0, 32], sizes = [1, 32], strides = [1, 1]} : vector<1x64xf32> to vector<1x32xf32>
    %199 = vector.extract_strided_slice %81 {offsets = [0, 32], sizes = [1, 32], strides = [1, 1]} : vector<1x64xf32> to vector<1x32xf32>
    %200 = vector.extract_strided_slice %62 {offsets = [0, 32], sizes = [1, 32], strides = [1, 1]} : vector<1x64xf32> to vector<1x32xf32>
    %201 = vector.extract_strided_slice %43 {offsets = [0, 32], sizes = [1, 32], strides = [1, 1]} : vector<1x64xf32> to vector<1x32xf32>
    %202 = tpu.concatenate %194, %195, %196, %197, %198, %199, %200, %201 in 0 : vector<1x32xf32>, vector<1x32xf32>, vector<1x32xf32>, vector<1x32xf32>, vector<1x32xf32>, vector<1x32xf32>, vector<1x32xf32>, vector<1x32xf32> -> vector<8x32xf32>
    %203 = tpu.concatenate %193, %202 in 1 : vector<8x32xf32>, vector<8x32xf32> -> vector<8x64xf32>
    %c0_34 = arith.constant 0 : index
    %c0_35 = arith.constant 0 : index
    %204 = vector.load %arg4[%c0_34, %c0_35] : memref<128x256xf32, #tpu.memory_space<vmem>>, vector<128x256xf32>
    %c0_36 = arith.constant 0 : index
    %c0_37 = arith.constant 0 : index
    %205 = vector.load %arg5[%c0_36, %c0_37] : memref<64x256xf32, #tpu.memory_space<vmem>>, vector<64x256xf32>
    %c0_38 = arith.constant 0 : index
    %c0_39 = arith.constant 0 : index
    %206 = vector.load %arg6[%c0_38, %c0_39] : memref<1x256xf32, #tpu.memory_space<vmem>>, vector<1x256xf32>
    %207 = vector.extract_strided_slice %203 {offsets = [7, 0], sizes = [1, 64], strides = [1, 1]} : vector<8x64xf32> to vector<1x64xf32>
    %208 = vector.extract_strided_slice %203 {offsets = [6, 0], sizes = [1, 64], strides = [1, 1]} : vector<8x64xf32> to vector<1x64xf32>
    %209 = vector.extract_strided_slice %203 {offsets = [5, 0], sizes = [1, 64], strides = [1, 1]} : vector<8x64xf32> to vector<1x64xf32>
    %210 = vector.extract_strided_slice %203 {offsets = [4, 0], sizes = [1, 64], strides = [1, 1]} : vector<8x64xf32> to vector<1x64xf32>
    %211 = vector.extract_strided_slice %203 {offsets = [3, 0], sizes = [1, 64], strides = [1, 1]} : vector<8x64xf32> to vector<1x64xf32>
    %212 = vector.extract_strided_slice %203 {offsets = [2, 0], sizes = [1, 64], strides = [1, 1]} : vector<8x64xf32> to vector<1x64xf32>
    %213 = vector.extract_strided_slice %203 {offsets = [1, 0], sizes = [1, 64], strides = [1, 1]} : vector<8x64xf32> to vector<1x64xf32>
    %214 = vector.extract_strided_slice %203 {offsets = [0, 0], sizes = [1, 64], strides = [1, 1]} : vector<8x64xf32> to vector<1x64xf32>
    %215 = tpu.concatenate %207, %208, %209, %210, %211, %212, %213, %214 in 0 : vector<1x64xf32>, vector<1x64xf32>, vector<1x64xf32>, vector<1x64xf32>, vector<1x64xf32>, vector<1x64xf32>, vector<1x64xf32>, vector<1x64xf32> -> vector<8x64xf32>
    %216 = tpu.concatenate %203, %215 in 1 : vector<8x64xf32>, vector<8x64xf32> -> vector<8x128xf32>
    %cst_40 = arith.constant dense<0.000000e+00> : vector<8x256xf32>
    %217 = tpu.matmul %216, %204, %cst_40 {dimension_numbers = #tpu.dot_dimension_numbers<[1], [0], [0], [1], [0, 0, 1, 1], [], []>} : vector<8x128xf32>, vector<128x256xf32>, vector<8x256xf32> -> vector<8x256xf32>
    %218 = vector.broadcast %206 : vector<1x256xf32> to vector<8x256xf32>
    %219 = arith.addf %217, %218 : vector<8x256xf32>
    %220 = vector.extract_strided_slice %0 {offsets = [2, 0], sizes = [1, 32], strides = [1, 1]} : vector<4x32xf32> to vector<1x32xf32>
    %221 = vector.extract_strided_slice %0 {offsets = [3, 0], sizes = [1, 32], strides = [1, 1]} : vector<4x32xf32> to vector<1x32xf32>
    %222 = tpu.concatenate %220, %221 in 1 : vector<1x32xf32>, vector<1x32xf32> -> vector<1x64xf32>
    %223 = vector.extract_strided_slice %1 {offsets = [2, 0], sizes = [1, 32], strides = [1, 1]} : vector<4x32xf32> to vector<1x32xf32>
    %224 = vector.extract_strided_slice %1 {offsets = [3, 0], sizes = [1, 32], strides = [1, 1]} : vector<4x32xf32> to vector<1x32xf32>
    %225 = tpu.concatenate %223, %224 in 1 : vector<1x32xf32>, vector<1x32xf32> -> vector<1x64xf32>
    %cst_41 = arith.constant dense<0.000000e+00> : vector<1x256xf32>
    %226 = tpu.matmul %222, %205, %cst_41 {dimension_numbers = #tpu.dot_dimension_numbers<[1], [0], [0], [1], [0, 0, 1, 1], [], []>} : vector<1x64xf32>, vector<64x256xf32>, vector<1x256xf32> -> vector<1x256xf32>
    %227 = vector.extract_strided_slice %219 {offsets = [0, 0], sizes = [1, 256], strides = [1, 1]} : vector<8x256xf32> to vector<1x256xf32>
    %228 = arith.addf %226, %227 : vector<1x256xf32>
    %229 = vector.extract_strided_slice %228 {offsets = [0, 0], sizes = [1, 192], strides = [1, 1]} : vector<1x256xf32> to vector<1x192xf32>
    %230 = arith.negf %229 : vector<1x192xf32>
    %231 = math.exp %230 : vector<1x192xf32>
    %cst_42 = arith.constant 1.000000e+00 : f32
    %232 = vector.broadcast %cst_42 : f32 to vector<1x192xf32>
    %233 = arith.addf %232, %231 : vector<1x192xf32>
    %234 = arith.divf %232, %233 : vector<1x192xf32>
    %235 = vector.extract_strided_slice %228 {offsets = [0, 192], sizes = [1, 64], strides = [1, 1]} : vector<1x256xf32> to vector<1x64xf32>
    %236 = math.tanh %235 : vector<1x64xf32>
    %237 = vector.extract_strided_slice %234 {offsets = [0, 64], sizes = [1, 64], strides = [1, 1]} : vector<1x192xf32> to vector<1x64xf32>
    %238 = arith.mulf %237, %225 : vector<1x64xf32>
    %239 = vector.extract_strided_slice %234 {offsets = [0, 0], sizes = [1, 64], strides = [1, 1]} : vector<1x192xf32> to vector<1x64xf32>
    %240 = arith.mulf %239, %236 : vector<1x64xf32>
    %241 = arith.addf %238, %240 : vector<1x64xf32>
    %242 = vector.extract_strided_slice %234 {offsets = [0, 128], sizes = [1, 64], strides = [1, 1]} : vector<1x192xf32> to vector<1x64xf32>
    %243 = math.tanh %241 : vector<1x64xf32>
    %244 = arith.mulf %242, %243 : vector<1x64xf32>
    %cst_43 = arith.constant dense<0.000000e+00> : vector<1x256xf32>
    %245 = tpu.matmul %244, %205, %cst_43 {dimension_numbers = #tpu.dot_dimension_numbers<[1], [0], [0], [1], [0, 0, 1, 1], [], []>} : vector<1x64xf32>, vector<64x256xf32>, vector<1x256xf32> -> vector<1x256xf32>
    %246 = vector.extract_strided_slice %219 {offsets = [1, 0], sizes = [1, 256], strides = [1, 1]} : vector<8x256xf32> to vector<1x256xf32>
    %247 = arith.addf %245, %246 : vector<1x256xf32>
    %248 = vector.extract_strided_slice %247 {offsets = [0, 0], sizes = [1, 192], strides = [1, 1]} : vector<1x256xf32> to vector<1x192xf32>
    %249 = arith.negf %248 : vector<1x192xf32>
    %250 = math.exp %249 : vector<1x192xf32>
    %cst_44 = arith.constant 1.000000e+00 : f32
    %251 = vector.broadcast %cst_44 : f32 to vector<1x192xf32>
    %252 = arith.addf %251, %250 : vector<1x192xf32>
    %253 = arith.divf %251, %252 : vector<1x192xf32>
    %254 = vector.extract_strided_slice %247 {offsets = [0, 192], sizes = [1, 64], strides = [1, 1]} : vector<1x256xf32> to vector<1x64xf32>
    %255 = math.tanh %254 : vector<1x64xf32>
    %256 = vector.extract_strided_slice %253 {offsets = [0, 64], sizes = [1, 64], strides = [1, 1]} : vector<1x192xf32> to vector<1x64xf32>
    %257 = arith.mulf %256, %241 : vector<1x64xf32>
    %258 = vector.extract_strided_slice %253 {offsets = [0, 0], sizes = [1, 64], strides = [1, 1]} : vector<1x192xf32> to vector<1x64xf32>
    %259 = arith.mulf %258, %255 : vector<1x64xf32>
    %260 = arith.addf %257, %259 : vector<1x64xf32>
    %261 = vector.extract_strided_slice %253 {offsets = [0, 128], sizes = [1, 64], strides = [1, 1]} : vector<1x192xf32> to vector<1x64xf32>
    %262 = math.tanh %260 : vector<1x64xf32>
    %263 = arith.mulf %261, %262 : vector<1x64xf32>
    %cst_45 = arith.constant dense<0.000000e+00> : vector<1x256xf32>
    %264 = tpu.matmul %263, %205, %cst_45 {dimension_numbers = #tpu.dot_dimension_numbers<[1], [0], [0], [1], [0, 0, 1, 1], [], []>} : vector<1x64xf32>, vector<64x256xf32>, vector<1x256xf32> -> vector<1x256xf32>
    %265 = vector.extract_strided_slice %219 {offsets = [2, 0], sizes = [1, 256], strides = [1, 1]} : vector<8x256xf32> to vector<1x256xf32>
    %266 = arith.addf %264, %265 : vector<1x256xf32>
    %267 = vector.extract_strided_slice %266 {offsets = [0, 0], sizes = [1, 192], strides = [1, 1]} : vector<1x256xf32> to vector<1x192xf32>
    %268 = arith.negf %267 : vector<1x192xf32>
    %269 = math.exp %268 : vector<1x192xf32>
    %cst_46 = arith.constant 1.000000e+00 : f32
    %270 = vector.broadcast %cst_46 : f32 to vector<1x192xf32>
    %271 = arith.addf %270, %269 : vector<1x192xf32>
    %272 = arith.divf %270, %271 : vector<1x192xf32>
    %273 = vector.extract_strided_slice %266 {offsets = [0, 192], sizes = [1, 64], strides = [1, 1]} : vector<1x256xf32> to vector<1x64xf32>
    %274 = math.tanh %273 : vector<1x64xf32>
    %275 = vector.extract_strided_slice %272 {offsets = [0, 64], sizes = [1, 64], strides = [1, 1]} : vector<1x192xf32> to vector<1x64xf32>
    %276 = arith.mulf %275, %260 : vector<1x64xf32>
    %277 = vector.extract_strided_slice %272 {offsets = [0, 0], sizes = [1, 64], strides = [1, 1]} : vector<1x192xf32> to vector<1x64xf32>
    %278 = arith.mulf %277, %274 : vector<1x64xf32>
    %279 = arith.addf %276, %278 : vector<1x64xf32>
    %280 = vector.extract_strided_slice %272 {offsets = [0, 128], sizes = [1, 64], strides = [1, 1]} : vector<1x192xf32> to vector<1x64xf32>
    %281 = math.tanh %279 : vector<1x64xf32>
    %282 = arith.mulf %280, %281 : vector<1x64xf32>
    %cst_47 = arith.constant dense<0.000000e+00> : vector<1x256xf32>
    %283 = tpu.matmul %282, %205, %cst_47 {dimension_numbers = #tpu.dot_dimension_numbers<[1], [0], [0], [1], [0, 0, 1, 1], [], []>} : vector<1x64xf32>, vector<64x256xf32>, vector<1x256xf32> -> vector<1x256xf32>
    %284 = vector.extract_strided_slice %219 {offsets = [3, 0], sizes = [1, 256], strides = [1, 1]} : vector<8x256xf32> to vector<1x256xf32>
    %285 = arith.addf %283, %284 : vector<1x256xf32>
    %286 = vector.extract_strided_slice %285 {offsets = [0, 0], sizes = [1, 192], strides = [1, 1]} : vector<1x256xf32> to vector<1x192xf32>
    %287 = arith.negf %286 : vector<1x192xf32>
    %288 = math.exp %287 : vector<1x192xf32>
    %cst_48 = arith.constant 1.000000e+00 : f32
    %289 = vector.broadcast %cst_48 : f32 to vector<1x192xf32>
    %290 = arith.addf %289, %288 : vector<1x192xf32>
    %291 = arith.divf %289, %290 : vector<1x192xf32>
    %292 = vector.extract_strided_slice %285 {offsets = [0, 192], sizes = [1, 64], strides = [1, 1]} : vector<1x256xf32> to vector<1x64xf32>
    %293 = math.tanh %292 : vector<1x64xf32>
    %294 = vector.extract_strided_slice %291 {offsets = [0, 64], sizes = [1, 64], strides = [1, 1]} : vector<1x192xf32> to vector<1x64xf32>
    %295 = arith.mulf %294, %279 : vector<1x64xf32>
    %296 = vector.extract_strided_slice %291 {offsets = [0, 0], sizes = [1, 64], strides = [1, 1]} : vector<1x192xf32> to vector<1x64xf32>
    %297 = arith.mulf %296, %293 : vector<1x64xf32>
    %298 = arith.addf %295, %297 : vector<1x64xf32>
    %299 = vector.extract_strided_slice %291 {offsets = [0, 128], sizes = [1, 64], strides = [1, 1]} : vector<1x192xf32> to vector<1x64xf32>
    %300 = math.tanh %298 : vector<1x64xf32>
    %301 = arith.mulf %299, %300 : vector<1x64xf32>
    %cst_49 = arith.constant dense<0.000000e+00> : vector<1x256xf32>
    %302 = tpu.matmul %301, %205, %cst_49 {dimension_numbers = #tpu.dot_dimension_numbers<[1], [0], [0], [1], [0, 0, 1, 1], [], []>} : vector<1x64xf32>, vector<64x256xf32>, vector<1x256xf32> -> vector<1x256xf32>
    %303 = vector.extract_strided_slice %219 {offsets = [4, 0], sizes = [1, 256], strides = [1, 1]} : vector<8x256xf32> to vector<1x256xf32>
    %304 = arith.addf %302, %303 : vector<1x256xf32>
    %305 = vector.extract_strided_slice %304 {offsets = [0, 0], sizes = [1, 192], strides = [1, 1]} : vector<1x256xf32> to vector<1x192xf32>
    %306 = arith.negf %305 : vector<1x192xf32>
    %307 = math.exp %306 : vector<1x192xf32>
    %cst_50 = arith.constant 1.000000e+00 : f32
    %308 = vector.broadcast %cst_50 : f32 to vector<1x192xf32>
    %309 = arith.addf %308, %307 : vector<1x192xf32>
    %310 = arith.divf %308, %309 : vector<1x192xf32>
    %311 = vector.extract_strided_slice %304 {offsets = [0, 192], sizes = [1, 64], strides = [1, 1]} : vector<1x256xf32> to vector<1x64xf32>
    %312 = math.tanh %311 : vector<1x64xf32>
    %313 = vector.extract_strided_slice %310 {offsets = [0, 64], sizes = [1, 64], strides = [1, 1]} : vector<1x192xf32> to vector<1x64xf32>
    %314 = arith.mulf %313, %298 : vector<1x64xf32>
    %315 = vector.extract_strided_slice %310 {offsets = [0, 0], sizes = [1, 64], strides = [1, 1]} : vector<1x192xf32> to vector<1x64xf32>
    %316 = arith.mulf %315, %312 : vector<1x64xf32>
    %317 = arith.addf %314, %316 : vector<1x64xf32>
    %318 = vector.extract_strided_slice %310 {offsets = [0, 128], sizes = [1, 64], strides = [1, 1]} : vector<1x192xf32> to vector<1x64xf32>
    %319 = math.tanh %317 : vector<1x64xf32>
    %320 = arith.mulf %318, %319 : vector<1x64xf32>
    %cst_51 = arith.constant dense<0.000000e+00> : vector<1x256xf32>
    %321 = tpu.matmul %320, %205, %cst_51 {dimension_numbers = #tpu.dot_dimension_numbers<[1], [0], [0], [1], [0, 0, 1, 1], [], []>} : vector<1x64xf32>, vector<64x256xf32>, vector<1x256xf32> -> vector<1x256xf32>
    %322 = vector.extract_strided_slice %219 {offsets = [5, 0], sizes = [1, 256], strides = [1, 1]} : vector<8x256xf32> to vector<1x256xf32>
    %323 = arith.addf %321, %322 : vector<1x256xf32>
    %324 = vector.extract_strided_slice %323 {offsets = [0, 0], sizes = [1, 192], strides = [1, 1]} : vector<1x256xf32> to vector<1x192xf32>
    %325 = arith.negf %324 : vector<1x192xf32>
    %326 = math.exp %325 : vector<1x192xf32>
    %cst_52 = arith.constant 1.000000e+00 : f32
    %327 = vector.broadcast %cst_52 : f32 to vector<1x192xf32>
    %328 = arith.addf %327, %326 : vector<1x192xf32>
    %329 = arith.divf %327, %328 : vector<1x192xf32>
    %330 = vector.extract_strided_slice %323 {offsets = [0, 192], sizes = [1, 64], strides = [1, 1]} : vector<1x256xf32> to vector<1x64xf32>
    %331 = math.tanh %330 : vector<1x64xf32>
    %332 = vector.extract_strided_slice %329 {offsets = [0, 64], sizes = [1, 64], strides = [1, 1]} : vector<1x192xf32> to vector<1x64xf32>
    %333 = arith.mulf %332, %317 : vector<1x64xf32>
    %334 = vector.extract_strided_slice %329 {offsets = [0, 0], sizes = [1, 64], strides = [1, 1]} : vector<1x192xf32> to vector<1x64xf32>
    %335 = arith.mulf %334, %331 : vector<1x64xf32>
    %336 = arith.addf %333, %335 : vector<1x64xf32>
    %337 = vector.extract_strided_slice %329 {offsets = [0, 128], sizes = [1, 64], strides = [1, 1]} : vector<1x192xf32> to vector<1x64xf32>
    %338 = math.tanh %336 : vector<1x64xf32>
    %339 = arith.mulf %337, %338 : vector<1x64xf32>
    %cst_53 = arith.constant dense<0.000000e+00> : vector<1x256xf32>
    %340 = tpu.matmul %339, %205, %cst_53 {dimension_numbers = #tpu.dot_dimension_numbers<[1], [0], [0], [1], [0, 0, 1, 1], [], []>} : vector<1x64xf32>, vector<64x256xf32>, vector<1x256xf32> -> vector<1x256xf32>
    %341 = vector.extract_strided_slice %219 {offsets = [6, 0], sizes = [1, 256], strides = [1, 1]} : vector<8x256xf32> to vector<1x256xf32>
    %342 = arith.addf %340, %341 : vector<1x256xf32>
    %343 = vector.extract_strided_slice %342 {offsets = [0, 0], sizes = [1, 192], strides = [1, 1]} : vector<1x256xf32> to vector<1x192xf32>
    %344 = arith.negf %343 : vector<1x192xf32>
    %345 = math.exp %344 : vector<1x192xf32>
    %cst_54 = arith.constant 1.000000e+00 : f32
    %346 = vector.broadcast %cst_54 : f32 to vector<1x192xf32>
    %347 = arith.addf %346, %345 : vector<1x192xf32>
    %348 = arith.divf %346, %347 : vector<1x192xf32>
    %349 = vector.extract_strided_slice %342 {offsets = [0, 192], sizes = [1, 64], strides = [1, 1]} : vector<1x256xf32> to vector<1x64xf32>
    %350 = math.tanh %349 : vector<1x64xf32>
    %351 = vector.extract_strided_slice %348 {offsets = [0, 64], sizes = [1, 64], strides = [1, 1]} : vector<1x192xf32> to vector<1x64xf32>
    %352 = arith.mulf %351, %336 : vector<1x64xf32>
    %353 = vector.extract_strided_slice %348 {offsets = [0, 0], sizes = [1, 64], strides = [1, 1]} : vector<1x192xf32> to vector<1x64xf32>
    %354 = arith.mulf %353, %350 : vector<1x64xf32>
    %355 = arith.addf %352, %354 : vector<1x64xf32>
    %356 = vector.extract_strided_slice %348 {offsets = [0, 128], sizes = [1, 64], strides = [1, 1]} : vector<1x192xf32> to vector<1x64xf32>
    %357 = math.tanh %355 : vector<1x64xf32>
    %358 = arith.mulf %356, %357 : vector<1x64xf32>
    %cst_55 = arith.constant dense<0.000000e+00> : vector<1x256xf32>
    %359 = tpu.matmul %358, %205, %cst_55 {dimension_numbers = #tpu.dot_dimension_numbers<[1], [0], [0], [1], [0, 0, 1, 1], [], []>} : vector<1x64xf32>, vector<64x256xf32>, vector<1x256xf32> -> vector<1x256xf32>
    %360 = vector.extract_strided_slice %219 {offsets = [7, 0], sizes = [1, 256], strides = [1, 1]} : vector<8x256xf32> to vector<1x256xf32>
    %361 = arith.addf %359, %360 : vector<1x256xf32>
    %362 = vector.extract_strided_slice %361 {offsets = [0, 0], sizes = [1, 192], strides = [1, 1]} : vector<1x256xf32> to vector<1x192xf32>
    %363 = arith.negf %362 : vector<1x192xf32>
    %364 = math.exp %363 : vector<1x192xf32>
    %cst_56 = arith.constant 1.000000e+00 : f32
    %365 = vector.broadcast %cst_56 : f32 to vector<1x192xf32>
    %366 = arith.addf %365, %364 : vector<1x192xf32>
    %367 = arith.divf %365, %366 : vector<1x192xf32>
    %368 = vector.extract_strided_slice %361 {offsets = [0, 192], sizes = [1, 64], strides = [1, 1]} : vector<1x256xf32> to vector<1x64xf32>
    %369 = math.tanh %368 : vector<1x64xf32>
    %370 = vector.extract_strided_slice %367 {offsets = [0, 64], sizes = [1, 64], strides = [1, 1]} : vector<1x192xf32> to vector<1x64xf32>
    %371 = arith.mulf %370, %355 : vector<1x64xf32>
    %372 = vector.extract_strided_slice %367 {offsets = [0, 0], sizes = [1, 64], strides = [1, 1]} : vector<1x192xf32> to vector<1x64xf32>
    %373 = arith.mulf %372, %369 : vector<1x64xf32>
    %374 = arith.addf %371, %373 : vector<1x64xf32>
    %375 = vector.extract_strided_slice %367 {offsets = [0, 128], sizes = [1, 64], strides = [1, 1]} : vector<1x192xf32> to vector<1x64xf32>
    %376 = math.tanh %374 : vector<1x64xf32>
    %377 = arith.mulf %375, %376 : vector<1x64xf32>
    %378 = vector.extract_strided_slice %377 {offsets = [0, 0], sizes = [1, 32], strides = [1, 1]} : vector<1x64xf32> to vector<1x32xf32>
    %c2 = arith.constant 2 : index
    %c0_57 = arith.constant 0 : index
    %379 = vector.load %arg12[%c2, %c0_57] : memref<4x32xf32, #tpu.memory_space<vmem>>, vector<1x32xf32>
    tpu.vector_store %arg12[%c2, %c0_57], %378 {strides = array<i32>} : memref<4x32xf32, #tpu.memory_space<vmem>>, vector<1x32xf32>,
    %380 = vector.extract_strided_slice %377 {offsets = [0, 32], sizes = [1, 32], strides = [1, 1]} : vector<1x64xf32> to vector<1x32xf32>
    %c3 = arith.constant 3 : index
    %c0_58 = arith.constant 0 : index
    %381 = vector.load %arg12[%c3, %c0_58] : memref<4x32xf32, #tpu.memory_space<vmem>>, vector<1x32xf32>
    tpu.vector_store %arg12[%c3, %c0_58], %380 {strides = array<i32>} : memref<4x32xf32, #tpu.memory_space<vmem>>, vector<1x32xf32>,
    %382 = vector.extract_strided_slice %374 {offsets = [0, 0], sizes = [1, 32], strides = [1, 1]} : vector<1x64xf32> to vector<1x32xf32>
    %c2_59 = arith.constant 2 : index
    %c0_60 = arith.constant 0 : index
    %383 = vector.load %arg13[%c2_59, %c0_60] : memref<4x32xf32, #tpu.memory_space<vmem>>, vector<1x32xf32>
    tpu.vector_store %arg13[%c2_59, %c0_60], %382 {strides = array<i32>} : memref<4x32xf32, #tpu.memory_space<vmem>>, vector<1x32xf32>,
    %384 = vector.extract_strided_slice %374 {offsets = [0, 32], sizes = [1, 32], strides = [1, 1]} : vector<1x64xf32> to vector<1x32xf32>
    %c3_61 = arith.constant 3 : index
    %c0_62 = arith.constant 0 : index
    %385 = vector.load %arg13[%c3_61, %c0_62] : memref<4x32xf32, #tpu.memory_space<vmem>>, vector<1x32xf32>
    tpu.vector_store %arg13[%c3_61, %c0_62], %384 {strides = array<i32>} : memref<4x32xf32, #tpu.memory_space<vmem>>, vector<1x32xf32>,
    %386 = vector.extract_strided_slice %244 {offsets = [0, 0], sizes = [1, 32], strides = [1, 1]} : vector<1x64xf32> to vector<1x32xf32>
    %387 = vector.extract_strided_slice %263 {offsets = [0, 0], sizes = [1, 32], strides = [1, 1]} : vector<1x64xf32> to vector<1x32xf32>
    %388 = vector.extract_strided_slice %282 {offsets = [0, 0], sizes = [1, 32], strides = [1, 1]} : vector<1x64xf32> to vector<1x32xf32>
    %389 = vector.extract_strided_slice %301 {offsets = [0, 0], sizes = [1, 32], strides = [1, 1]} : vector<1x64xf32> to vector<1x32xf32>
    %390 = vector.extract_strided_slice %320 {offsets = [0, 0], sizes = [1, 32], strides = [1, 1]} : vector<1x64xf32> to vector<1x32xf32>
    %391 = vector.extract_strided_slice %339 {offsets = [0, 0], sizes = [1, 32], strides = [1, 1]} : vector<1x64xf32> to vector<1x32xf32>
    %392 = vector.extract_strided_slice %358 {offsets = [0, 0], sizes = [1, 32], strides = [1, 1]} : vector<1x64xf32> to vector<1x32xf32>
    %393 = vector.extract_strided_slice %377 {offsets = [0, 0], sizes = [1, 32], strides = [1, 1]} : vector<1x64xf32> to vector<1x32xf32>
    %394 = tpu.concatenate %386, %387, %388, %389, %390, %391, %392, %393 in 0 : vector<1x32xf32>, vector<1x32xf32>, vector<1x32xf32>, vector<1x32xf32>, vector<1x32xf32>, vector<1x32xf32>, vector<1x32xf32>, vector<1x32xf32> -> vector<8x32xf32>
    %395 = vector.extract_strided_slice %377 {offsets = [0, 32], sizes = [1, 32], strides = [1, 1]} : vector<1x64xf32> to vector<1x32xf32>
    %396 = vector.extract_strided_slice %358 {offsets = [0, 32], sizes = [1, 32], strides = [1, 1]} : vector<1x64xf32> to vector<1x32xf32>
    %397 = vector.extract_strided_slice %339 {offsets = [0, 32], sizes = [1, 32], strides = [1, 1]} : vector<1x64xf32> to vector<1x32xf32>
    %398 = vector.extract_strided_slice %320 {offsets = [0, 32], sizes = [1, 32], strides = [1, 1]} : vector<1x64xf32> to vector<1x32xf32>
    %399 = vector.extract_strided_slice %301 {offsets = [0, 32], sizes = [1, 32], strides = [1, 1]} : vector<1x64xf32> to vector<1x32xf32>
    %400 = vector.extract_strided_slice %282 {offsets = [0, 32], sizes = [1, 32], strides = [1, 1]} : vector<1x64xf32> to vector<1x32xf32>
    %401 = vector.extract_strided_slice %263 {offsets = [0, 32], sizes = [1, 32], strides = [1, 1]} : vector<1x64xf32> to vector<1x32xf32>
    %402 = vector.extract_strided_slice %244 {offsets = [0, 32], sizes = [1, 32], strides = [1, 1]} : vector<1x64xf32> to vector<1x32xf32>
    %403 = tpu.concatenate %395, %396, %397, %398, %399, %400, %401, %402 in 0 : vector<1x32xf32>, vector<1x32xf32>, vector<1x32xf32>, vector<1x32xf32>, vector<1x32xf32>, vector<1x32xf32>, vector<1x32xf32>, vector<1x32xf32> -> vector<8x32xf32>
    %404 = tpu.concatenate %394, %403 in 1 : vector<8x32xf32>, vector<8x32xf32> -> vector<8x64xf32>
    %c0_63 = arith.constant 0 : index
    %c0_64 = arith.constant 0 : index
    %405 = vector.load %arg7[%c0_63, %c0_64] : memref<64x4xf32, #tpu.memory_space<vmem>>, vector<64x4xf32>
    %cst_65 = arith.constant dense<0.000000e+00> : vector<8x4xf32>
    %406 = tpu.matmul %404, %405, %cst_65 {dimension_numbers = #tpu.dot_dimension_numbers<[1], [0], [0], [1], [0, 0, 1, 1], [], []>} : vector<8x64xf32>, vector<64x4xf32>, vector<8x4xf32> -> vector<8x4xf32>
    %c0_66 = arith.constant 0 : index
    %c0_67 = arith.constant 0 : index
    %407 = vector.load %arg8[%c0_66, %c0_67] : memref<1x4xf32, #tpu.memory_space<vmem>>, vector<1x4xf32>
    %408 = vector.broadcast %407 : vector<1x4xf32> to vector<8x4xf32>
    %409 = arith.addf %406, %408 : vector<8x4xf32>
    %410 = arith.negf %409 : vector<8x4xf32>
    %411 = math.exp %410 : vector<8x4xf32>
    %cst_68 = arith.constant 1.000000e+00 : f32
    %412 = vector.broadcast %cst_68 : f32 to vector<8x4xf32>
    %413 = arith.addf %412, %411 : vector<8x4xf32>
    %414 = arith.divf %412, %413 : vector<8x4xf32>
    %c0_69 = arith.constant 0 : index
    %c0_70 = arith.constant 0 : index
    %415 = vector.load %arg11[%c0_69, %c0_70] : memref<8x4xf32, #tpu.memory_space<vmem>>, vector<8x4xf32>
    tpu.vector_store %arg11[%c0_69, %c0_70], %414 {strides = array<i32>} : memref<8x4xf32, #tpu.memory_space<vmem>>, vector<8x4xf32>,
    return
  }
}

</mosaic_0001>

<bundles_post_ra>
// kernel: bi_lstm_forward.1
= control target key start
LH: loop header
LB: loop body
LE: loop exit
PB: predicated region body
PF: predicated region fallthrough
CT: control target
= control target key end

     0   :  { %19 = vsyncpa [#allocation3], 0  ;;  %s3654_s0 = inlined_call_operand.vmem [shape: f32[8,16], index: 0, kind: input, shape index: {}]   ;;  %s3655_s1 = inlined_call_operand.vmem [shape: f32[32,256], index: 1, kind: input, shape index: {}]   ;;  %s3656_s2 = inlined_call_operand.hbm [shape: f32[64,256], index: 2, kind: input, shape index: {}]   ;;  %s3657_s3 = inlined_call_operand.vmem [shape: f32[1,256], index: 3, kind: input, shape index: {}]   ;;  %s3658_s4 = inlined_call_operand.hbm [shape: f32[128,256], index: 4, kind: input, shape index: {}]   ;;  %s3659_s5 = inlined_call_operand.hbm [shape: f32[64,256], index: 5, kind: input, shape index: {}]   ;;  %s3660_s6 = inlined_call_operand.vmem [shape: f32[1,256], index: 6, kind: input, shape index: {}]   ;;  %s3661_s7 = inlined_call_operand.vmem [shape: f32[64,4], index: 7, kind: input, shape index: {}]   ;;  %s3662_s8 = inlined_call_operand.vmem [shape: f32[1,4], index: 8, kind: input, shape index: {}]   ;;  %s3663_s9 = inlined_call_operand.hbm [shape: f32[4,32], index: 9, kind: input, shape index: {}]   ;;  %s3664_s10 = inlined_call_operand.hbm [shape: f32[4,32], index: 10, kind: input, shape index: {}]   ;;  %s3665_s11 = inlined_call_operand.vmem [shape: f32[8,4], index: 11, kind: output, shape index: {0}]   ;;  %s3666_s12 = inlined_call_operand.hbm [shape: f32[4,32], index: 12, kind: output, shape index: {1}]   ;;  %s3667_s13 = inlined_call_operand.hbm [shape: f32[4,32], index: 13, kind: output, shape index: {2}]  }
   0x1   :  { %20 = vsyncpa [#allocation6], 0 }
   0x2   :  { %21 = vsyncpa [#allocation9], 0 }
   0x3   :  { %22 = vsyncpa [#allocation4], 0 }
   0x4   :  { %23 = vsyncpa [#allocation13], 0  ;;  %s2835_s25 = smov [#allocation5]   ;;  %s2836_s27 = smov [#allocation8]  }
   0x5   :  { %s47_s26 = sshll.u32 %s2835_s25, 4  ;;  %s78_s28 = sshll.u32 %s2836_s27, 4  ;;  %s48_s26 = int_to_ptr.vmem [resolvable:$true] %s47_s26  ;;  %s79_s28 = int_to_ptr.vmem [resolvable:$true] %s78_s28 }
   0x6   :  { %s2693_s29 = scalar_lea.vmem %s48_s26, 4096  ;;  %p2698_p1 = scmp.lt.s32.totalorder %s48_s26, %s48_s26 }
   0x7   :  { %p2694_p0 = scmp.ne.s32.totalorder %s48_s26, %s2693_s29  ;;  %p2699_p2 = scmp.lt.s32.totalorder %s2693_s29, %s2693_s29 }
   0x9   :  { %p2700_p3 = por %p2699_p2, %p2698_p1 }
   0xb   :  { %p2701_p4 = pnand %p2700_p3, %p2694_p0 }
   0xd   :  { %2704 = shalt.err (!%p2701_p4)
}
   0xe   :  { %s2837_s30 = smov 256   ;;  %s2838_s14 = smov 16  }
   0xf   :  { %53 = dma.hbm_to_vmem [thread:$0]  %s3658_s4, 4096, %s48_s26, [#allocation6], %s2837_s30, %s2837_s30, %s2838_s14  }
  0x10   :  { %s2713_s17 = scalar_lea.vmem %s79_s28, 64  ;;  %p2718_p6 = scmp.lt.s32.totalorder %s79_s28, %s79_s28 }
  0x11   :  { %p2714_p5 = scmp.ne.s32.totalorder %s79_s28, %s2713_s17  ;;  %p2719_p7 = scmp.lt.s32.totalorder %s2713_s17, %s2713_s17 }
  0x13   :  { %p2720_p8 = por %p2719_p7, %p2718_p6 }
  0x15   :  { %p2721_p9 = pnand %p2720_p8, %p2714_p5 }
  0x17   :  { %2724 = shalt.err (!%p2721_p9)
}
  0x18   :  { %81 = dma.hbm_to_vmem [thread:$0]  %s3663_s9, 64, %s79_s28, [#allocation9]  }
  0x19   :  { %s2839_s20 = smov [#allocation2]   ;;  %s2840_s22 = smov [#allocation7]  }
  0x1a   :  { %s33_s21 = sshll.u32 %s2839_s20, 4  ;;  %s59_s23 = sshll.u32 %s2840_s22, 4  ;;  %s34_s21 = int_to_ptr.vmem [resolvable:$true] %s33_s21  ;;  %s60_s23 = int_to_ptr.vmem [resolvable:$true] %s59_s23 }
  0x1b   :  { %s2733_s24 = scalar_lea.vmem %s34_s21, 2048  ;;  %p2738_p11 = scmp.lt.s32.totalorder %s34_s21, %s34_s21 }
  0x1c   :  { %p2734_p10 = scmp.ne.s32.totalorder %s34_s21, %s2733_s24  ;;  %p2739_p12 = scmp.lt.s32.totalorder %s2733_s24, %s2733_s24 }
  0x1e   :  { %p2740_p13 = por %p2739_p12, %p2738_p11 }
  0x20   :  { %p2741_p0 = pnand %p2740_p13, %p2734_p10 }
  0x22   :  { %2744 = shalt.err (!%p2741_p0)
}
  0x23   :  { %39 = dma.hbm_to_vmem [thread:$0]  %s3656_s2, 2048, %s34_s21, [#allocation3], %s2837_s30, %s2837_s30, %s2838_s14  }
  0x24   :  { %s2753_s9 = scalar_lea.vmem %s60_s23, 2048  ;;  %p2758_p2 = scmp.lt.s32.totalorder %s60_s23, %s60_s23 }
  0x25   :  { %p2754_p1 = scmp.ne.s32.totalorder %s60_s23, %s2753_s9  ;;  %p2759_p3 = scmp.lt.s32.totalorder %s2753_s9, %s2753_s9 }
  0x27   :  { %p2760_p4 = por %p2759_p3, %p2758_p2 }
  0x29   :  { %p2761_p5 = pnand %p2760_p4, %p2754_p1 }
  0x2b   :  { %2764 = shalt.err (!%p2761_p5)
}
  0x2c   :  { %65 = dma.hbm_to_vmem [thread:$0]  %s3659_s5, 2048, %s60_s23, [#allocation6], %s2837_s30, %s2837_s30, %s2838_s14  }
  0x2d   :  { %s2841_s28 = smov [#allocation10]  }
  0x2e   :  { %s88_s29 = sshll.u32 %s2841_s28, 4  ;;  %s89_s29 = int_to_ptr.vmem [resolvable:$true] %s88_s29 }
  0x2f   :  { %s2773_s15 = scalar_lea.vmem %s89_s29, 64  ;;  %p2778_p7 = scmp.lt.s32.totalorder %s89_s29, %s89_s29 }
  0x30   :  { %p2774_p6 = scmp.ne.s32.totalorder %s89_s29, %s2773_s15  ;;  %p2779_p8 = scmp.lt.s32.totalorder %s2773_s15, %s2773_s15 }
  0x32   :  { %p2780_p9 = por %p2779_p8, %p2778_p7 }
  0x34   :  { %p2781_p10 = pnand %p2780_p9, %p2774_p6 }
  0x36   :  { %2784 = shalt.err (!%p2781_p10)
}
  0x37   :  { %91 = dma.hbm_to_vmem [thread:$0]  %s3664_s10, 64, %s89_s29, [#allocation9]  }
  0x38   :  { %2825 = dma.done.wait [#allocation3], 2048  }
  0x39   :  { %2826 = vsyncadd [#allocation3], 4294965248 }
  0x3a   :  { %2827 = dma.done.wait [#allocation6], 6144  }
  0x3b   :  { %2828 = vsyncadd [#allocation6], 4294961152 }
  0x3c   :  { %2829 = dma.done.wait [#allocation9], 128  }
  0x3d   :  { %2830 = vsyncadd [#allocation9], 4294967168  ;;  %v2842_v0 = vmov 0.0   ;;  %v2948_v1 = vld [vmem:[%s3654_s0] sm:$0xff]  ;;  %vm144_vm0 = vcmask 1040384   ;;  %vm146_vm1 = vcmask 1041408   ;;  %v165_v47 = vlaneseq }
  0x3e   :  { %243 = vmatprep.mubr.f32.mxu0 %v2842_v0  ;;  %330 = vmatprep.mubr.f32.mxu1 %v2842_v0  ;;  %v2950_v2 = vld [vmem:[#allocation2 + $0x78] sm:$0xff]  ;;  %v136_v3 = vrot.slane %v2948_v1, 7  ;;  %v138_v4 = vrot.slane %v2948_v1, 5  ;;  %v140_v5 = vrot.slane %v2948_v1, 3  ;;  %v142_v6 = vrot.slane %v2948_v1, 1  ;;  %v2957_v7 = vld [vmem:[#allocation2 + $0x70] sm:$0xff] }
  0x3f   :  { %282 = vmatprep.subr.mxu1 %v2950_v2  ;;  %v2959_v8 = vld [vmem:[#allocation2 + $0x68] sm:$0xff]  ;;  %vm148_vm2 = vcmask 1042432   ;;  %v2962_v9 = vld [vmem:[#allocation2 + $0x60] sm:$0xff]  ;;  %v117_v10 = vld [vmem:[%s3655_s1 + $0x38] sm:$0xff]  ;;  %vm150_vm3 = vcmask 1043456   ;;  %vm152_vm4 = vcmask 1044480  }
  0x40   :  { %283 = vmatpush1.msra.mxu1 %v2957_v7  ;;  %v2967_v11 = vld [vmem:[#allocation2 + $0x58] sm:$0xff]  ;;  %v145_v12 = vsel %vm144_vm0, %v136_v3, %v138_v4  ;;  %203 = vmatprep.subr.mxu0 %v117_v10  ;;  %v116_v13 = vld [vmem:[%s3655_s1 + $0x30] sm:$0xff]  ;;  %v115_v15 = vld [vmem:[%s3655_s1 + $0x28] sm:$0xff]  ;;  %vm154_vm5 = vcmask 1045504   ;;  %vm156_vm6 = vcmask 1046528   ;;  %vm162_vm7 = vcmask 130048  }
  0x41   :  { %284 = vmatprep.subr.mxu1 %v2959_v8  ;;  %v2974_v14 = vld [vmem:[#allocation2 + $0x50] sm:$0xff]  ;;  %v147_v16 = vsel %vm146_vm1, %v145_v12, %v140_v5  ;;  %204 = vmatpush1.msra.mxu0 %v116_v13  ;;  %v2981_v17 = vld [vmem:[#allocation2 + $0x48] sm:$0xff]  ;;  %v114_v18 = vld [vmem:[%s3655_s1 + $0x20] sm:$0xff]  ;;  %vm175_vm8 = vcmask 261120   ;;  %vm262_vm9 = vcmask 523264   ;;  %v3084_v48 = vshrl.u32 %v165_v47, 7 }
  0x42   :  { %285 = vmatpush1.msra.mxu1 %v2962_v9  ;;  %v149_v19 = vsel %vm148_vm2, %v147_v16, %v142_v6  ;;  %205 = vmatprep.subr.mxu0 %v115_v15  ;;  %v2988_v20 = vld [vmem:[#allocation2 + $0x40] sm:$0xff]  ;;  %v113_v21 = vld [vmem:[%s3655_s1 + $0x18] sm:$0xff]  ;;  %v112_v22 = vld [vmem:[%s3655_s1 + $0x10] sm:$0xff]  ;;  %vm1129_vm10 = vcmask 253952   ;;  %vm2846_vm11 = vmmov 0   ;;  %s2848_s27 = smov [#allocation12]  }
  0x43   :  { %286 = vmatprep.subr.mxu1 %v2967_v11  ;;  %v151_v23 = vsel %vm150_vm3, %v149_v19, %v136_v3  ;;  %206 = vmatpush1.msra.mxu0 %v114_v18  ;;  %v2998_v24 = vld [vmem:[#allocation2 + $0x38] sm:$0xff]  ;;  %v111_v25 = vld [vmem:[%s3655_s1 + $0x8] sm:$0xff]  ;;  %v107_v27 = vld [vmem:[#allocation8] sm:$0xf]  ;;  %v167_v49 = vsub.s32 0, %v3084_v48  ;;  %v171_v51 = vsub.s32 1, %v3084_v48 }
  0x44   :  { %287 = vmatpush1.msra.mxu1 %v2974_v14  ;;  %v153_v26 = vsel %vm152_vm4, %v151_v23, %v138_v4  ;;  %207 = vmatprep.subr.mxu0 %v113_v21  ;;  %v3005_v28 = vld [vmem:[#allocation2 + $0x30] sm:$0xff]  ;;  %v3009_v30 = vld [vmem:[#allocation2 + $0x28] sm:$0xff]  ;;  %v110_v31 = vld [vmem:[%s3655_s1] sm:$0xff]  ;;  %v251_v36 = vrot.slane %v107_v27, 1  ;;  %s2843_s1 = smov 32   ;;  %s2378_s28 = sshll.u32 %s2848_s27, 4  ;;  %s2379_s28 = int_to_ptr.vmem [resolvable:$true] %s2378_s28 }
  0x45   :  { %288 = vmatprep.subr.mxu1 %v2981_v17  ;;  %v155_v29 = vsel %vm154_vm5, %v153_v26, %v140_v5  ;;  %208 = vmatpush1.msra.mxu0 %v112_v22  ;;  %v108_v32 = vld [vmem:[#allocation10] sm:$0xf]  ;;  %v3020_v37 = vld [vmem:[#allocation2 + $0x18] sm:$0xff]  ;;  %v3023_v38 = vld [vmem:[#allocation2 + $0x10] sm:$0xff] }
  0x46   :  { %289 = vmatpush1.msra.mxu1 %v2988_v20  ;;  %v157_v33 = vsel %vm156_vm6, %v155_v29, %v142_v6  ;;  %209 = vmatprep.subr.mxu0 %v111_v25  ;;  %v3016_v34 = vld [vmem:[#allocation2 + $0x20] sm:$0xff]  ;;  %v257_v35 = vrot.slane %v108_v32, 1  ;;  %v3027_v39 = vld [vmem:[#allocation2 + $0x8] sm:$0xff] }
  0x47   :  { %290 = vmatprep.subr.mxu1 %v2998_v24  ;;  %159 = vrot.lane.b32.xlu0 %v157_v33, %s2838_s14  ;;  %v3030_v40 = vld [vmem:[#allocation2] sm:$0xff]  ;;  %s2844_s14 = smov 64  }
  0x48   :  { %291 = vmatpush1.msra.mxu1 %v3005_v28  ;;  %210 = vmatpush1.msra.mxu0 %v110_v31  ;;  %v134_v50 = vld [vmem:[%s3657_s3] sm:$0x3] }
  0x49   :  { %292 = vmatprep.subr.mxu1 %v3009_v30  ;;  %258 = vrot.lane.b32.xlu1 %v257_v35, %s2843_s1  ;;  %v168_v52 = vrot.slane %v134_v50, %v167_v49  ;;  %v172_v54 = vrot.slane %v134_v50, %v171_v51 }
  0x4a   :  { %293 = vmatpush1.msra.mxu1 %v3016_v34  ;;  %396 = vmatprep.subr.mxu0 %v2950_v2 }
  0x4b   :  { %294 = vmatprep.subr.mxu1 %v3020_v37  ;;  %252 = vrot.lane.b32.xlu0 %v251_v36, %s2843_s1 }
  0x4c   :  { %295 = vmatpush1.msra.mxu1 %v3023_v38 }
  0x4d   :  { %296 = vmatprep.subr.mxu1 %v3027_v39 }
  0x4e   :  { %297 = vmatpush1.msra.mxu1 %v3030_v40 }
  0x4f   :  { %504 = vmatprep.subr.mxu1 %v2950_v2 }
  0xb9   :  { %v160_v41 = vpop.permute.xlu0 %159 }
  0xba   :  { %v163_v42 = vsel %vm162_vm7, %v2948_v1, %v160_v41 }
  0xbb   :  { %2395 = vmatmul.mubr.msk.f32.vlgmr.msra.gmra.mxu0 %vm175_vm8, %v163_v42  ;;  %v259_v43 = vpop.permute.xlu1 %258 }
  0xbc   :  { %v3041_v44 = vsel %vm175_vm8, %v108_v32, %v259_v43  ;;  %397 = vmatpush1.msra.mxu0 %v2957_v7  ;;  %444 = vmatprep.mubr.f32.mxu0 %v2842_v0 }
  0xbd   :  { %v253_v45 = vpop.permute.xlu0 %252  ;;  %351 = vrot.lane.b32.xlu0 %v3041_v44, %s2844_s14  ;;  %398 = vmatprep.subr.mxu0 %v2959_v8 }
  0xbe   :  { %v3049_v46 = vsel %vm175_vm8, %v107_v27, %v253_v45  ;;  %399 = vmatpush1.msra.mxu0 %v2962_v9 }
  0xbf   :  { %2396 = vmatmul.mubr.msk.f32.vlgmr.msra.gmra.mxu1 %vm262_vm9, %v3049_v46  ;;  %400 = vmatprep.subr.mxu0 %v2967_v11 }
  0xc0   :  { %401 = vmatpush1.msra.mxu0 %v2974_v14  ;;  %505 = vmatpush1.msra.mxu1 %v2957_v7 }
  0xc1   :  { %402 = vmatprep.subr.mxu0 %v2981_v17  ;;  %506 = vmatprep.subr.mxu1 %v2959_v8 }
  0xc2   :  { %403 = vmatpush1.msra.mxu0 %v2988_v20  ;;  %507 = vmatpush1.msra.mxu1 %v2962_v9 }
  0xc3   :  { %404 = vmatprep.subr.mxu0 %v2998_v24  ;;  %508 = vmatprep.subr.mxu1 %v2967_v11 }
  0xc4   :  { %405 = vmatpush1.msra.mxu0 %v3005_v28  ;;  %509 = vmatpush1.msra.mxu1 %v2974_v14 }
  0xc5   :  { %406 = vmatprep.subr.mxu0 %v3009_v30  ;;  %510 = vmatprep.subr.mxu1 %v2981_v17 }
  0xc6   :  { %407 = vmatpush1.msra.mxu0 %v3016_v34  ;;  %511 = vmatpush1.msra.mxu1 %v2988_v20 }
  0xc7   :  { %408 = vmatprep.subr.mxu0 %v3020_v37  ;;  %512 = vmatprep.subr.mxu1 %v2998_v24 }
  0xc8   :  { %409 = vmatpush1.msra.mxu0 %v3023_v38  ;;  %513 = vmatpush1.msra.mxu1 %v3005_v28 }
  0xc9   :  { %410 = vmatprep.subr.mxu0 %v3027_v39  ;;  %514 = vmatprep.subr.mxu1 %v3009_v30 }
  0xca   :  { %411 = vmatpush1.msra.mxu0 %v3030_v40  ;;  %515 = vmatpush1.msra.mxu1 %v3016_v34 }
  0xcb   :  { %516 = vmatprep.subr.mxu1 %v3020_v37  ;;  %552 = vmatprep.mubr.f32.mxu1 %v2842_v0 }
  0xcc   :  { %517 = vmatpush1.msra.mxu1 %v3023_v38  ;;  %612 = vmatprep.subr.mxu0 %v2950_v2 }
  0xcd   :  { %518 = vmatprep.subr.mxu1 %v3027_v39 }
  0xce   :  { %519 = vmatpush1.msra.mxu1 %v3030_v40 }
  0xcf   :  { %720 = vmatprep.subr.mxu1 %v2950_v2 }
 0x12f   :  { %v352_v10 = vpop.permute.xlu0 %351 }
 0x17b   :  { %v245_v53 = vpop.f32.mrf.mxu0 }
 0x17c   :  { %v3095_v56 = vadd.f32 %v245_v53, %v168_v52 }
 0x17d   :  { %v247_v55 = vpop.f32.mrf.mxu0 }
 0x17e   :  { %v3097_v58 = vadd.f32 %v247_v55, %v172_v54  ;;  %v373_v26 = vrot.slane %v3095_v56, 1 }
 0x17f   :  { %v332_v57 = vpop.f32.mrf.mxu1 }
 0x180   :  { %v333_v59 = vadd.f32 %v332_v57, %v3095_v56  ;;  %v374_v31 = vrot.slane %v3097_v58, 1 }
 0x181   :  { %v334_v60 = vpop.f32.mrf.mxu1 }
 0x182   :  { %v335_v61 = vadd.f32 %v334_v60, %v3097_v58  ;;  %v2397_v63 = vmul.f32 -1.442695, %v333_v59 }
 0x184   :  { %2489 = vtanh.f32 %v335_v61  ;;  %v2398_v18 = vmul.f32 -1.442695, %v335_v61 }
 0x185   :  { %2491 = vpow2.f32 %v2397_v63  ;;  %v481_v63 = vrot.slane %v3095_v56, 2 }
 0x191   :  { %v2490_v62 = vpop.eup %2489 }
 0x192   :  { %356 = vrot.lane.b32.xlu1 %v2490_v62, %s2844_s14  ;;  %v2492_v1 = vpop.eup %2491 }
 0x193   :  { %v343_v3 = vadd.f32 1.0, %v2492_v1 }
 0x195   :  { %2493 = vrcp.f32 %v343_v3 }
 0x1a2   :  { %v2494_v4 = vpop.eup %2493 }
 0x1a3   :  { %v354_v12 = vmul.f32 %v2494_v4, %v352_v10 }
 0x204   :  { %v357_v5 = vpop.permute.xlu1 %356 }
 0x205   :  { %v359_v6 = vmul.f32 %v2494_v4, %v357_v5  ;;  %v482_v4 = vrot.slane %v3097_v58, 2 }
 0x207   :  { %361 = vrot.lane.b32.xlu1 %v359_v6, %s2844_s14 }
 0x279   :  { %v362_v13 = vpop.permute.xlu1 %361 }
 0x27a   :  { %v364_v15 = vadd.f32 %v362_v13, %v354_v12 }
 0x27c   :  { %2495 = vtanh.f32 %v364_v15 }
 0x27d   :  { %2497 = vpow2.f32 %v2398_v18 }
 0x289   :  { %v2496_v16 = vpop.eup %2495 }
 0x28a   :  { %367 = vrot.lane.b32.xlu0 %v2496_v16, %s2844_s14  ;;  %v2498_v19 = vpop.eup %2497 }
 0x28b   :  { %v344_v21 = vadd.f32 1.0, %v2498_v19 }
 0x28d   :  { %2499 = vrcp.f32 %v344_v21 }
 0x29a   :  { %v2500_v22 = vpop.eup %2499 }
 0x2fc   :  { %v368_v23 = vpop.permute.xlu0 %367 }
 0x2fd   :  { %v3104_v25 = vmul.f32 %v2500_v22, %v368_v23 }
 0x2ff   :  { %2399 = vmatmul.mubr.msk.f32.vlgmr.msra.gmra.mxu0 %vm262_vm9, %v3104_v25 }
 0x300   :  { %613 = vmatpush1.msra.mxu0 %v2957_v7  ;;  %660 = vmatprep.mubr.f32.mxu0 %v2842_v0 }
 0x301   :  { %614 = vmatprep.subr.mxu0 %v2959_v8 }
 0x302   :  { %615 = vmatpush1.msra.mxu0 %v2962_v9 }
 0x303   :  { %616 = vmatprep.subr.mxu0 %v2967_v11 }
 0x304   :  { %617 = vmatpush1.msra.mxu0 %v2974_v14 }
 0x305   :  { %618 = vmatprep.subr.mxu0 %v2981_v17 }
 0x306   :  { %619 = vmatpush1.msra.mxu0 %v2988_v20 }
 0x307   :  { %620 = vmatprep.subr.mxu0 %v2998_v24 }
 0x308   :  { %621 = vmatpush1.msra.mxu0 %v3005_v28 }
 0x309   :  { %622 = vmatprep.subr.mxu0 %v3009_v30 }
 0x30a   :  { %623 = vmatpush1.msra.mxu0 %v3016_v34 }
 0x30b   :  { %624 = vmatprep.subr.mxu0 %v3020_v37 }
 0x30c   :  { %625 = vmatpush1.msra.mxu0 %v3023_v38 }
 0x30d   :  { %626 = vmatprep.subr.mxu0 %v3027_v39 }
 0x30e   :  { %627 = vmatpush1.msra.mxu0 %v3030_v40 }
 0x30f   :  { %828 = vmatprep.subr.mxu0 %v2950_v2 }
 0x3bf   :  { %v446_v27 = vpop.f32.mrf.mxu0 }
 0x3c0   :  { %v447_v29 = vadd.f32 %v446_v27, %v373_v26 }
 0x3c1   :  { %v448_v32 = vpop.f32.mrf.mxu0 }
 0x3c2   :  { %v449_v33 = vadd.f32 %v448_v32, %v374_v31  ;;  %v2400_v36 = vmul.f32 -1.442695, %v447_v29 }
 0x3c4   :  { %2501 = vtanh.f32 %v449_v33  ;;  %v2401_v55 = vmul.f32 -1.442695, %v449_v33 }
 0x3c5   :  { %2503 = vpow2.f32 %v2400_v36 }
 0x3d1   :  { %v2502_v35 = vpop.eup %2501 }
 0x3d2   :  { %466 = vrot.lane.b32.xlu1 %v2502_v35, %s2844_s14  ;;  %v2504_v41 = vpop.eup %2503 }
 0x3d3   :  { %v457_v42 = vadd.f32 1.0, %v2504_v41 }
 0x3d5   :  { %2505 = vrcp.f32 %v457_v42 }
 0x3e2   :  { %v2506_v43 = vpop.eup %2505 }
 0x3e3   :  { %v464_v50 = vmul.f32 %v2506_v43, %v364_v15 }
 0x444   :  { %v467_v45 = vpop.permute.xlu1 %466 }
 0x445   :  { %v469_v47 = vmul.f32 %v2506_v43, %v467_v45  ;;  %v589_v45 = vrot.slane %v3095_v56, 3 }
 0x447   :  { %471 = vrot.lane.b32.xlu0 %v469_v47, %s2844_s14 }
 0x4b9   :  { %v472_v52 = vpop.permute.xlu0 %471 }
 0x4ba   :  { %v474_v53 = vadd.f32 %v472_v52, %v464_v50  ;;  %v590_v52 = vrot.slane %v3097_v58, 3 }
 0x4bc   :  { %2507 = vtanh.f32 %v474_v53 }
 0x4bd   :  { %2509 = vpow2.f32 %v2401_v55 }
 0x4c9   :  { %v2508_v54 = vpop.eup %2507 }
 0x4ca   :  { %477 = vrot.lane.b32.xlu1 %v2508_v54, %s2844_s14  ;;  %v2510_v57 = vpop.eup %2509 }
 0x4cb   :  { %v458_v59 = vadd.f32 1.0, %v2510_v57 }
 0x4cd   :  { %2511 = vrcp.f32 %v458_v59 }
 0x4da   :  { %v2512_v60 = vpop.eup %2511 }
 0x53c   :  { %v478_v61 = vpop.permute.xlu1 %477 }
 0x53d   :  { %v3130_v62 = vmul.f32 %v2512_v60, %v478_v61 }
 0x53f   :  { %2402 = vmatmul.mubr.msk.f32.vlgmr.msra.gmra.mxu1 %vm262_vm9, %v3130_v62  ;;  %v1145_v33 = vrot.slane %v3130_v62, 7 }
 0x540   :  { %721 = vmatpush1.msra.mxu1 %v2957_v7  ;;  %768 = vmatprep.mubr.f32.mxu1 %v2842_v0 }
 0x541   :  { %722 = vmatprep.subr.mxu1 %v2959_v8  ;;  %v1159_v42 = vsel %vm144_vm0, %v3104_v25, %v1145_v33 }
 0x542   :  { %723 = vmatpush1.msra.mxu1 %v2962_v9 }
 0x543   :  { %724 = vmatprep.subr.mxu1 %v2967_v11 }
 0x544   :  { %725 = vmatpush1.msra.mxu1 %v2974_v14 }
 0x545   :  { %726 = vmatprep.subr.mxu1 %v2981_v17 }
 0x546   :  { %727 = vmatpush1.msra.mxu1 %v2988_v20 }
 0x547   :  { %728 = vmatprep.subr.mxu1 %v2998_v24 }
 0x548   :  { %729 = vmatpush1.msra.mxu1 %v3005_v28 }
 0x549   :  { %730 = vmatprep.subr.mxu1 %v3009_v30 }
 0x54a   :  { %731 = vmatpush1.msra.mxu1 %v3016_v34 }
 0x54b   :  { %732 = vmatprep.subr.mxu1 %v3020_v37 }
 0x54c   :  { %733 = vmatpush1.msra.mxu1 %v3023_v38 }
 0x54d   :  { %734 = vmatprep.subr.mxu1 %v3027_v39 }
 0x54e   :  { %735 = vmatpush1.msra.mxu1 %v3030_v40 }
 0x54f   :  { %936 = vmatprep.subr.mxu1 %v2950_v2 }
 0x5ff   :  { %v554_v1 = vpop.f32.mrf.mxu1 }
 0x600   :  { %v555_v3 = vadd.f32 %v554_v1, %v481_v63 }
 0x601   :  { %v556_v5 = vpop.f32.mrf.mxu1 }
 0x602   :  { %v557_v6 = vadd.f32 %v556_v5, %v482_v4  ;;  %v2403_v12 = vmul.f32 -1.442695, %v555_v3 }
 0x604   :  { %2513 = vtanh.f32 %v557_v6  ;;  %v2404_v27 = vmul.f32 -1.442695, %v557_v6 }
 0x605   :  { %2515 = vpow2.f32 %v2403_v12 }
 0x611   :  { %v2514_v10 = vpop.eup %2513 }
 0x612   :  { %574 = vrot.lane.b32.xlu0 %v2514_v10, %s2844_s14  ;;  %v2516_v13 = vpop.eup %2515 }
 0x613   :  { %v565_v15 = vadd.f32 1.0, %v2516_v13 }
 0x615   :  { %2517 = vrcp.f32 %v565_v15 }
 0x622   :  { %v2518_v16 = vpop.eup %2517 }
 0x623   :  { %v572_v21 = vmul.f32 %v2518_v16, %v474_v53 }
 0x684   :  { %v575_v18 = vpop.permute.xlu0 %574 }
 0x685   :  { %v577_v19 = vmul.f32 %v2518_v16, %v575_v18 }
 0x687   :  { %579 = vrot.lane.b32.xlu1 %v577_v19, %s2844_s14 }
 0x6f9   :  { %v580_v22 = vpop.permute.xlu1 %579 }
 0x6fa   :  { %v582_v23 = vadd.f32 %v580_v22, %v572_v21  ;;  %v697_v21 = vrot.slane %v3095_v56, 4 }
 0x6fc   :  { %2519 = vtanh.f32 %v582_v23 }
 0x6fd   :  { %2521 = vpow2.f32 %v2404_v27 }
 0x709   :  { %v2520_v26 = vpop.eup %2519 }
 0x70a   :  { %585 = vrot.lane.b32.xlu0 %v2520_v26, %s2844_s14  ;;  %v2522_v29 = vpop.eup %2521  ;;  %v698_v26 = vrot.slane %v3097_v58, 4 }
 0x70b   :  { %v566_v31 = vadd.f32 1.0, %v2522_v29 }
 0x70d   :  { %2523 = vrcp.f32 %v566_v31 }
 0x71a   :  { %v2524_v32 = vpop.eup %2523 }
 0x77c   :  { %v586_v35 = vpop.permute.xlu0 %585 }
 0x77d   :  { %v3157_v36 = vmul.f32 %v2524_v32, %v586_v35 }
 0x77f   :  { %v1147_v41 = vrot.slane %v3157_v36, 6  ;;  %2405 = vmatmul.mubr.msk.f32.vlgmr.msra.gmra.mxu0 %vm262_vm9, %v3157_v36 }
 0x780   :  { %829 = vmatpush1.msra.mxu0 %v2957_v7  ;;  %876 = vmatprep.mubr.f32.mxu0 %v2842_v0 }
 0x781   :  { %v1160_v43 = vsel %vm146_vm1, %v1159_v42, %v1147_v41  ;;  %830 = vmatprep.subr.mxu0 %v2959_v8 }
 0x782   :  { %831 = vmatpush1.msra.mxu0 %v2962_v9 }
 0x783   :  { %832 = vmatprep.subr.mxu0 %v2967_v11 }
 0x784   :  { %833 = vmatpush1.msra.mxu0 %v2974_v14 }
 0x785   :  { %834 = vmatprep.subr.mxu0 %v2981_v17 }
 0x786   :  { %835 = vmatpush1.msra.mxu0 %v2988_v20 }
 0x787   :  { %836 = vmatprep.subr.mxu0 %v2998_v24 }
 0x788   :  { %837 = vmatpush1.msra.mxu0 %v3005_v28 }
 0x789   :  { %838 = vmatprep.subr.mxu0 %v3009_v30 }
 0x78a   :  { %839 = vmatpush1.msra.mxu0 %v3016_v34 }
 0x78b   :  { %840 = vmatprep.subr.mxu0 %v3020_v37 }
 0x78c   :  { %841 = vmatpush1.msra.mxu0 %v3023_v38 }
 0x78d   :  { %842 = vmatprep.subr.mxu0 %v3027_v39 }
 0x78e   :  { %843 = vmatpush1.msra.mxu0 %v3030_v40 }
 0x78f   :  { %1044 = vmatprep.subr.mxu0 %v2950_v2 }
 0x83f   :  { %v662_v47 = vpop.f32.mrf.mxu0 }
 0x840   :  { %v663_v50 = vadd.f32 %v662_v47, %v589_v45 }
 0x841   :  { %v664_v53 = vpop.f32.mrf.mxu0 }
 0x842   :  { %v665_v54 = vadd.f32 %v664_v53, %v590_v52  ;;  %v2406_v57 = vmul.f32 -1.442695, %v663_v50 }
 0x844   :  { %2525 = vtanh.f32 %v665_v54  ;;  %v2407_v6 = vmul.f32 -1.442695, %v665_v54 }
 0x845   :  { %2527 = vpow2.f32 %v2406_v57 }
 0x851   :  { %v2526_v55 = vpop.eup %2525 }
 0x852   :  { %682 = vrot.lane.b32.xlu1 %v2526_v55, %s2844_s14  ;;  %v2528_v59 = vpop.eup %2527 }
 0x853   :  { %v673_v60 = vadd.f32 1.0, %v2528_v59 }
 0x855   :  { %2529 = vrcp.f32 %v673_v60 }
 0x862   :  { %v2530_v61 = vpop.eup %2529 }
 0x863   :  { %v680_v1 = vmul.f32 %v2530_v61, %v582_v23 }
 0x8c4   :  { %v683_v63 = vpop.permute.xlu1 %682 }
 0x8c5   :  { %v685_v2 = vmul.f32 %v2530_v61, %v683_v63 }
 0x8c7   :  { %687 = vrot.lane.b32.xlu0 %v685_v2, %s2844_s14 }
 0x939   :  { %v688_v3 = vpop.permute.xlu0 %687 }
 0x93a   :  { %v690_v4 = vadd.f32 %v688_v3, %v680_v1 }
 0x93c   :  { %2531 = vtanh.f32 %v690_v4 }
 0x93d   :  { %2533 = vpow2.f32 %v2407_v6 }
 0x949   :  { %v2532_v5 = vpop.eup %2531 }
 0x94a   :  { %693 = vrot.lane.b32.xlu1 %v2532_v5, %s2844_s14  ;;  %v2534_v10 = vpop.eup %2533 }
 0x94b   :  { %v674_v12 = vadd.f32 1.0, %v2534_v10 }
 0x94d   :  { %2535 = vrcp.f32 %v674_v12 }
 0x95a   :  { %v2536_v13 = vpop.eup %2535 }
 0x9bc   :  { %v694_v15 = vpop.permute.xlu1 %693 }
 0x9bd   :  { %v3187_v16 = vmul.f32 %v2536_v13, %v694_v15 }
 0x9bf   :  { %v1149_v18 = vrot.slane %v3187_v16, 5  ;;  %2408 = vmatmul.mubr.msk.f32.vlgmr.msra.gmra.mxu1 %vm262_vm9, %v3187_v16 }
 0x9c0   :  { %937 = vmatpush1.msra.mxu1 %v2957_v7  ;;  %984 = vmatprep.mubr.f32.mxu1 %v2842_v0 }
 0x9c1   :  { %v1161_v19 = vsel %vm148_vm2, %v1160_v43, %v1149_v18  ;;  %938 = vmatprep.subr.mxu1 %v2959_v8  ;;  %v913_v18 = vrot.slane %v3095_v56, 6 }
 0x9c2   :  { %939 = vmatpush1.msra.mxu1 %v2962_v9 }
 0x9c3   :  { %940 = vmatprep.subr.mxu1 %v2967_v11 }
 0x9c4   :  { %941 = vmatpush1.msra.mxu1 %v2974_v14 }
 0x9c5   :  { %942 = vmatprep.subr.mxu1 %v2981_v17 }
 0x9c6   :  { %943 = vmatpush1.msra.mxu1 %v2988_v20 }
 0x9c7   :  { %944 = vmatprep.subr.mxu1 %v2998_v24 }
 0x9c8   :  { %945 = vmatpush1.msra.mxu1 %v3005_v28 }
 0x9c9   :  { %946 = vmatprep.subr.mxu1 %v3009_v30 }
 0x9ca   :  { %947 = vmatpush1.msra.mxu1 %v3016_v34 }
 0x9cb   :  { %948 = vmatprep.subr.mxu1 %v3020_v37 }
 0x9cc   :  { %949 = vmatpush1.msra.mxu1 %v3023_v38 }
 0x9cd   :  { %950 = vmatprep.subr.mxu1 %v3027_v39 }
 0x9ce   :  { %951 = vmatpush1.msra.mxu1 %v3030_v40 }
 0xa7f   :  { %v770_v22 = vpop.f32.mrf.mxu1 }
 0xa80   :  { %v771_v23 = vadd.f32 %v770_v22, %v697_v21  ;;  %v914_v22 = vrot.slane %v3097_v58, 6 }
 0xa81   :  { %v772_v27 = vpop.f32.mrf.mxu1 }
 0xa82   :  { %v773_v29 = vadd.f32 %v772_v27, %v698_v26  ;;  %v2409_v32 = vmul.f32 -1.442695, %v771_v23 }
 0xa84   :  { %2537 = vtanh.f32 %v773_v29  ;;  %v2410_v53 = vmul.f32 -1.442695, %v773_v29 }
 0xa85   :  { %2539 = vpow2.f32 %v2409_v32 }
 0xa91   :  { %v2538_v31 = vpop.eup %2537 }
 0xa92   :  { %790 = vrot.lane.b32.xlu0 %v2538_v31, %s2844_s14  ;;  %v2540_v33 = vpop.eup %2539 }
 0xa93   :  { %v781_v35 = vadd.f32 1.0, %v2540_v33 }
 0xa95   :  { %2541 = vrcp.f32 %v781_v35 }
 0xaa2   :  { %v2542_v41 = vpop.eup %2541 }
 0xaa3   :  { %v788_v45 = vmul.f32 %v2542_v41, %v690_v4 }
 0xb04   :  { %v791_v42 = vpop.permute.xlu0 %790 }
 0xb05   :  { %v793_v43 = vmul.f32 %v2542_v41, %v791_v42 }
 0xb07   :  { %795 = vrot.lane.b32.xlu1 %v793_v43, %s2844_s14 }
 0xb79   :  { %v796_v47 = vpop.permute.xlu1 %795 }
 0xb7a   :  { %v798_v50 = vadd.f32 %v796_v47, %v788_v45  ;;  %v3255_v47 = vld [vmem:[#allocation7 + $0x78] sm:$0xff] }
 0xb7c   :  { %2543 = vtanh.f32 %v798_v50 }
 0xb7d   :  { %2545 = vpow2.f32 %v2410_v53 }
 0xb89   :  { %v2544_v52 = vpop.eup %2543 }
 0xb8a   :  { %801 = vrot.lane.b32.xlu0 %v2544_v52, %s2844_s14  ;;  %v2546_v54 = vpop.eup %2545 }
 0xb8b   :  { %v782_v55 = vadd.f32 1.0, %v2546_v54 }
 0xb8d   :  { %2547 = vrcp.f32 %v782_v55 }
 0xb9a   :  { %v2548_v57 = vpop.eup %2547 }
 0xbfc   :  { %v802_v59 = vpop.permute.xlu0 %801 }
 0xbfd   :  { %v3214_v60 = vmul.f32 %v2548_v57, %v802_v59 }
 0xbff   :  { %v1151_v61 = vrot.slane %v3214_v60, 4  ;;  %2411 = vmatmul.mubr.msk.f32.vlgmr.msra.gmra.mxu0 %vm262_vm9, %v3214_v60 }
 0xc00   :  { %1045 = vmatpush1.msra.mxu0 %v2957_v7  ;;  %1092 = vmatprep.mubr.f32.mxu0 %v2842_v0  ;;  %v805_v7 = vrot.slane %v3095_v56, 5 }
 0xc01   :  { %v1162_v63 = vsel %vm150_vm3, %v1161_v19, %v1151_v61  ;;  %1046 = vmatprep.subr.mxu0 %v2959_v8  ;;  %v3261_v61 = vld [vmem:[#allocation7 + $0x70] sm:$0xff] }
 0xc02   :  { %1047 = vmatpush1.msra.mxu0 %v2962_v9 }
 0xc03   :  { %1048 = vmatprep.subr.mxu0 %v2967_v11  ;;  %v806_v11 = vrot.slane %v3097_v58, 5 }
 0xc04   :  { %1049 = vmatpush1.msra.mxu0 %v2974_v14 }
 0xc05   :  { %1050 = vmatprep.subr.mxu0 %v2981_v17 }
 0xc06   :  { %1051 = vmatpush1.msra.mxu0 %v2988_v20 }
 0xc07   :  { %1052 = vmatprep.subr.mxu0 %v2998_v24 }
 0xc08   :  { %1053 = vmatpush1.msra.mxu0 %v3005_v28 }
 0xc09   :  { %1054 = vmatprep.subr.mxu0 %v3009_v30 }
 0xc0a   :  { %1055 = vmatpush1.msra.mxu0 %v3016_v34 }
 0xc0b   :  { %1056 = vmatprep.subr.mxu0 %v3020_v37 }
 0xc0c   :  { %1057 = vmatpush1.msra.mxu0 %v3023_v38 }
 0xc0d   :  { %1058 = vmatprep.subr.mxu0 %v3027_v39 }
 0xc0e   :  { %1059 = vmatpush1.msra.mxu0 %v3030_v40 }
 0xc0f   :  { %1359 = vmatprep.subr.mxu0 %v3255_v47 }
 0xcbf   :  { %v878_v8 = vpop.f32.mrf.mxu0 }
 0xcc0   :  { %v879_v9 = vadd.f32 %v878_v8, %v805_v7  ;;  %v3268_v8 = vld [vmem:[#allocation7 + $0x60] sm:$0xff] }
 0xcc1   :  { %v880_v14 = vpop.f32.mrf.mxu0 }
 0xcc2   :  { %v881_v17 = vadd.f32 %v880_v14, %v806_v11  ;;  %v2412_v24 = vmul.f32 -1.442695, %v879_v9  ;;  %v3271_v9 = vld [vmem:[#allocation7 + $0x58] sm:$0xff]  ;;  %v3278_v14 = vld [vmem:[#allocation7 + $0x50] sm:$0xff] }
 0xcc4   :  { %2549 = vtanh.f32 %v881_v17  ;;  %v2413_v3 = vmul.f32 -1.442695, %v881_v17  ;;  %v3281_v17 = vld [vmem:[#allocation7 + $0x48] sm:$0xff] }
 0xcc5   :  { %2551 = vpow2.f32 %v2412_v24  ;;  %v3287_v24 = vld [vmem:[#allocation7 + $0x38] sm:$0xff] }
 0xcd1   :  { %v2550_v20 = vpop.eup %2549 }
 0xcd2   :  { %898 = vrot.lane.b32.xlu1 %v2550_v20, %s2844_s14  ;;  %v2552_v28 = vpop.eup %2551  ;;  %v3284_v20 = vld [vmem:[#allocation7 + $0x40] sm:$0xff] }
 0xcd3   :  { %v889_v30 = vadd.f32 1.0, %v2552_v28  ;;  %v3290_v28 = vld [vmem:[#allocation7 + $0x30] sm:$0xff] }
 0xcd5   :  { %2553 = vrcp.f32 %v889_v30  ;;  %v3293_v30 = vld [vmem:[#allocation7 + $0x28] sm:$0xff] }
 0xce2   :  { %v2554_v34 = vpop.eup %2553 }
 0xce3   :  { %v896_v39 = vmul.f32 %v2554_v34, %v798_v50 }
 0xd44   :  { %v899_v37 = vpop.permute.xlu1 %898 }
 0xd45   :  { %v901_v38 = vmul.f32 %v2554_v34, %v899_v37  ;;  %v3296_v34 = vld [vmem:[#allocation7 + $0x20] sm:$0xff]  ;;  %v3299_v37 = vld [vmem:[#allocation7 + $0x18] sm:$0xff] }
 0xd47   :  { %903 = vrot.lane.b32.xlu0 %v901_v38, %s2844_s14  ;;  %v3302_v38 = vld [vmem:[#allocation7 + $0x10] sm:$0xff] }
 0xdb9   :  { %v904_v40 = vpop.permute.xlu0 %903 }
 0xdba   :  { %v906_v2 = vadd.f32 %v904_v40, %v896_v39  ;;  %v3305_v39 = vld [vmem:[#allocation7 + $0x8] sm:$0xff]  ;;  %v3308_v40 = vld [vmem:[#allocation7] sm:$0xff] }
 0xdbc   :  { %2555 = vtanh.f32 %v906_v2 }
 0xdbd   :  { %2557 = vpow2.f32 %v2413_v3 }
 0xdc9   :  { %v2556_v1 = vpop.eup %2555 }
 0xdca   :  { %909 = vrot.lane.b32.xlu1 %v2556_v1, %s2844_s14  ;;  %v2558_v4 = vpop.eup %2557 }
 0xdcb   :  { %v890_v5 = vadd.f32 1.0, %v2558_v4  ;;  %v1022_v4 = vrot.slane %v3097_v58, 7 }
 0xdcd   :  { %2559 = vrcp.f32 %v890_v5 }
 0xdda   :  { %v2560_v6 = vpop.eup %2559 }
 0xe3c   :  { %v910_v10 = vpop.permute.xlu1 %909 }
 0xe3d   :  { %v3241_v12 = vmul.f32 %v2560_v6, %v910_v10 }
 0xe3f   :  { %v1153_v13 = vrot.slane %v3241_v12, 3  ;;  %2414 = vmatmul.mubr.msk.f32.vlgmr.msra.gmra.mxu1 %vm262_vm9, %v3241_v12 }
 0xe40   :  { %1333 = vmatprep.mubr.f32.mxu1 %v2842_v0 }
 0xe41   :  { %v1163_v15 = vsel %vm152_vm4, %v1162_v63, %v1153_v13  ;;  %v3263_v63 = vld [vmem:[#allocation7 + $0x68] sm:$0xff] }
 0xeff   :  { %v986_v19 = vpop.f32.mrf.mxu1 }
 0xf00   :  { %v987_v21 = vadd.f32 %v986_v19, %v913_v18 }
 0xf01   :  { %v988_v23 = vpop.f32.mrf.mxu1 }
 0xf02   :  { %v989_v26 = vadd.f32 %v988_v23, %v914_v22  ;;  %v2415_v29 = vmul.f32 -1.442695, %v987_v21 }
 0xf04   :  { %2561 = vtanh.f32 %v989_v26  ;;  %v2416_v52 = vmul.f32 -1.442695, %v989_v26 }
 0xf05   :  { %2563 = vpow2.f32 %v2415_v29  ;;  %v1218_v29 = vld [vmem:[#allocation5 + $0xf0] sm:$0xff] }
 0xf11   :  { %v2562_v27 = vpop.eup %2561 }
 0xf12   :  { %1006 = vrot.lane.b32.xlu0 %v2562_v27, %s2844_s14  ;;  %v2564_v31 = vpop.eup %2563  ;;  %v1219_v27 = vld [vmem:[#allocation5 + $0xf8] sm:$0xff] }
 0xf13   :  { %v997_v32 = vadd.f32 1.0, %v2564_v31  ;;  %v1217_v31 = vld [vmem:[#allocation5 + $0xe8] sm:$0xff]  ;;  %1269 = vmatprep.subr.mxu1 %v1219_v27 }
 0xf14   :  { %1270 = vmatpush1.msra.mxu1 %v1218_v29 }
 0xf15   :  { %2565 = vrcp.f32 %v997_v32  ;;  %v1216_v32 = vld [vmem:[#allocation5 + $0xe0] sm:$0xff]  ;;  %1271 = vmatprep.subr.mxu1 %v1217_v31 }
 0xf16   :  { %1272 = vmatpush1.msra.mxu1 %v1216_v32 }
 0xf22   :  { %v2566_v33 = vpop.eup %2565 }
 0xf23   :  { %v1004_v42 = vmul.f32 %v2566_v33, %v906_v2  ;;  %v1340_v2 = vrot.slane %v3049_v46, 2  ;;  %v1021_v46 = vrot.slane %v3095_v56, 7 }
 0xf84   :  { %v1007_v35 = vpop.permute.xlu0 %1006 }
 0xf85   :  { %v1009_v41 = vmul.f32 %v2566_v33, %v1007_v35  ;;  %v1215_v33 = vld [vmem:[#allocation5 + $0xd8] sm:$0xff]  ;;  %v1214_v35 = vld [vmem:[#allocation5 + $0xd0] sm:$0xff] }
 0xf86   :  { %1273 = vmatprep.subr.mxu1 %v1215_v33 }
 0xf87   :  { %1011 = vrot.lane.b32.xlu1 %v1009_v41, %s2844_s14  ;;  %v1213_v41 = vld [vmem:[#allocation5 + $0xc8] sm:$0xff]  ;;  %1274 = vmatpush1.msra.mxu1 %v1214_v35  ;;  %v1168_v35 = vrot.slane %v3241_v12, 6  ;;  %v1176_v12 = vrot.slane %v3130_v62, 2 }
 0xf88   :  { %1275 = vmatprep.subr.mxu1 %v1213_v41  ;;  %v1170_v41 = vrot.slane %v3214_v60, 5 }
 0xff9   :  { %v1012_v43 = vpop.permute.xlu1 %1011 }
 0xffa   :  { %v3252_v45 = vadd.f32 %v1012_v43, %v1004_v42  ;;  %v1212_v42 = vld [vmem:[#allocation5 + $0xc0] sm:$0xff]  ;;  %v1211_v43 = vld [vmem:[#allocation5 + $0xb8] sm:$0xff] }
 0xffb   :  { %1276 = vmatpush1.msra.mxu1 %v1212_v42 }
 0xffc   :  { %2567 = vtanh.f32 %v3252_v45  ;;  %1277 = vmatprep.subr.mxu1 %v1211_v43 }
 0xffd   :  { %2569 = vpow2.f32 %v2416_v52  ;;  %v1208_v52 = vld [vmem:[#allocation5 + $0xa0] sm:$0xff] }
0x1009   :  { %v2568_v50 = vpop.eup %2567 }
0x100a   :  { %1017 = vrot.lane.b32.xlu0 %v2568_v50, %s2844_s14  ;;  %v2570_v53 = vpop.eup %2569  ;;  %v1209_v50 = vld [vmem:[#allocation5 + $0xa8] sm:$0xff] }
0x100b   :  { %v998_v54 = vadd.f32 1.0, %v2570_v53  ;;  %v1207_v53 = vld [vmem:[#allocation5 + $0x98] sm:$0xff] }
0x100d   :  { %2571 = vrcp.f32 %v998_v54  ;;  %v1206_v54 = vld [vmem:[#allocation5 + $0x90] sm:$0xff] }
0x101a   :  { %v2572_v55 = vpop.eup %2571 }
0x107c   :  { %v1018_v57 = vpop.permute.xlu0 %1017 }
0x107d   :  { %v3259_v59 = vmul.f32 %v2572_v55, %v1018_v57  ;;  %v1205_v55 = vld [vmem:[#allocation5 + $0x88] sm:$0xff]  ;;  %v1204_v57 = vld [vmem:[#allocation5 + $0x80] sm:$0xff] }
0x107f   :  { %v1155_v7 = vrot.slane %v3259_v59, 2  ;;  %2417 = vmatmul.mubr.msk.f32.vlgmr.msra.gmra.mxu0 %vm262_vm9, %v3259_v59  ;;  %v1166_v32 = vrot.slane %v3259_v59, 7 }
0x1080   :  { %1360 = vmatpush1.msra.mxu0 %v3261_v61  ;;  %1407 = vmatprep.mubr.f32.mxu0 %v2842_v0 }
0x1081   :  { %v3275_v11 = vsel %vm154_vm5, %v1163_v15, %v1155_v7  ;;  %1361 = vmatprep.subr.mxu0 %v3263_v63  ;;  %v1203_v7 = vld [vmem:[#allocation5 + $0x78] sm:$0xff] }
0x1082   :  { %1362 = vmatpush1.msra.mxu0 %v3268_v8 }
0x1083   :  { %1363 = vmatprep.subr.mxu0 %v3271_v9 }
0x1084   :  { %1364 = vmatpush1.msra.mxu0 %v3278_v14 }
0x1085   :  { %1365 = vmatprep.subr.mxu0 %v3281_v17 }
0x1086   :  { %1366 = vmatpush1.msra.mxu0 %v3284_v20 }
0x1087   :  { %1367 = vmatprep.subr.mxu0 %v3287_v24 }
0x1088   :  { %1368 = vmatpush1.msra.mxu0 %v3290_v28 }
0x1089   :  { %1369 = vmatprep.subr.mxu0 %v3293_v30 }
0x108a   :  { %1370 = vmatpush1.msra.mxu0 %v3296_v34 }
0x108b   :  { %1371 = vmatprep.subr.mxu0 %v3299_v37 }
0x108c   :  { %1372 = vmatpush1.msra.mxu0 %v3302_v38 }
0x108d   :  { %1373 = vmatprep.subr.mxu0 %v3305_v39 }
0x108e   :  { %1374 = vmatpush1.msra.mxu0 %v3308_v40 }
0x108f   :  { %2420 = vmatmul.mubr.msk.f32.vlgmr.msra.gmra.mxu0 %vm262_vm9, %v1340_v2  ;;  %1473 = vmatprep.subr.mxu0 %v3255_v47  ;;  %v1202_v2 = vld [vmem:[#allocation5 + $0x70] sm:$0xff] }
0x1090   :  { %1474 = vmatpush1.msra.mxu0 %v3261_v61  ;;  %1521 = vmatprep.mubr.f32.mxu0 %v2842_v0 }
0x1091   :  { %1475 = vmatprep.subr.mxu0 %v3263_v63 }
0x1092   :  { %1476 = vmatpush1.msra.mxu0 %v3268_v8 }
0x1093   :  { %1477 = vmatprep.subr.mxu0 %v3271_v9 }
0x1094   :  { %1478 = vmatpush1.msra.mxu0 %v3278_v14 }
0x1095   :  { %1479 = vmatprep.subr.mxu0 %v3281_v17 }
0x1096   :  { %1480 = vmatpush1.msra.mxu0 %v3284_v20 }
0x1097   :  { %1481 = vmatprep.subr.mxu0 %v3287_v24 }
0x1098   :  { %1482 = vmatpush1.msra.mxu0 %v3290_v28 }
0x1099   :  { %1483 = vmatprep.subr.mxu0 %v3293_v30 }
0x109a   :  { %1484 = vmatpush1.msra.mxu0 %v3296_v34 }
0x109b   :  { %1485 = vmatprep.subr.mxu0 %v3299_v37 }
0x109c   :  { %1486 = vmatpush1.msra.mxu0 %v3302_v38 }
0x109d   :  { %1487 = vmatprep.subr.mxu0 %v3305_v39 }
0x109e   :  { %1488 = vmatpush1.msra.mxu0 %v3308_v40 }
0x109f   :  { %1689 = vmatprep.subr.mxu0 %v3255_v47 }
0x113f   :  { %v1094_v1 = vpop.f32.mrf.mxu0 }
0x1140   :  { %v1095_v3 = vadd.f32 %v1094_v1, %v1021_v46  ;;  %v1201_v46 = vld [vmem:[#allocation5 + $0x68] sm:$0xff]  ;;  %v1200_v1 = vld [vmem:[#allocation5 + $0x60] sm:$0xff] }
0x1141   :  { %v1096_v5 = vpop.f32.mrf.mxu0 }
0x1142   :  { %v3335_v6 = vadd.f32 %v1096_v5, %v1022_v4  ;;  %v2418_v13 = vmul.f32 -1.442695, %v1095_v3  ;;  %v1199_v3 = vld [vmem:[#allocation5 + $0x58] sm:$0xff]  ;;  %v1198_v4 = vld [vmem:[#allocation5 + $0x50] sm:$0xff]  ;;  %v1197_v5 = vld [vmem:[#allocation5 + $0x48] sm:$0xff] }
0x1144   :  { %2573 = vtanh.f32 %v3335_v6 }
0x1145   :  { %2575 = vpow2.f32 %v2418_v13  ;;  %v1195_v13 = vld [vmem:[#allocation5 + $0x38] sm:$0xff] }
0x1151   :  { %v2574_v10 = vpop.eup %2573 }
0x1152   :  { %1114 = vrot.lane.b32.xlu1 %v2574_v10, %s2844_s14  ;;  %v2576_v15 = vpop.eup %2575  ;;  %v1196_v10 = vld [vmem:[#allocation5 + $0x40] sm:$0xff] }
0x1153   :  { %v1105_v18 = vadd.f32 1.0, %v2576_v15  ;;  %v1194_v15 = vld [vmem:[#allocation5 + $0x30] sm:$0xff] }
0x1155   :  { %2577 = vrcp.f32 %v1105_v18  ;;  %v1193_v18 = vld [vmem:[#allocation5 + $0x28] sm:$0xff] }
0x1162   :  { %v2578_v19 = vpop.eup %2577 }
0x1163   :  { %v1112_v58 = vmul.f32 %v2578_v19, %v3252_v45  ;;  %v1210_v45 = vld [vmem:[#allocation5 + $0xb0] sm:$0xff] }
0x1164   :  { %1278 = vmatpush1.msra.mxu1 %v1210_v45  ;;  %v1174_v45 = vrot.slane %v3157_v36, 3 }
0x1165   :  { %1279 = vmatprep.subr.mxu1 %v1209_v50 }
0x1166   :  { %1280 = vmatpush1.msra.mxu1 %v1208_v52  ;;  %v1188_v52 = vld [vmem:[#allocation5] sm:$0xff] }
0x1167   :  { %1281 = vmatprep.subr.mxu1 %v1207_v53  ;;  %v1178_v53 = vrot.slane %v3104_v25, 1 }
0x1168   :  { %1282 = vmatpush1.msra.mxu1 %v1206_v54 }
0x1169   :  { %1283 = vmatprep.subr.mxu1 %v1205_v55 }
0x116a   :  { %1284 = vmatpush1.msra.mxu1 %v1204_v57 }
0x116b   :  { %1285 = vmatprep.subr.mxu1 %v1203_v7 }
0x116c   :  { %1286 = vmatpush1.msra.mxu1 %v1202_v2 }
0x116d   :  { %1287 = vmatprep.subr.mxu1 %v1201_v46 }
0x116e   :  { %1288 = vmatpush1.msra.mxu1 %v1200_v1 }
0x116f   :  { %1289 = vmatprep.subr.mxu1 %v1199_v3 }
0x1170   :  { %1290 = vmatpush1.msra.mxu1 %v1198_v4 }
0x1171   :  { %1291 = vmatprep.subr.mxu1 %v1197_v5 }
0x1172   :  { %1292 = vmatpush1.msra.mxu1 %v1196_v10 }
0x1173   :  { %1293 = vmatprep.subr.mxu1 %v1195_v13  ;;  %v1427_v13 = vrot.slane %v3041_v44, 2  ;;  %v1236_v44 = vld [vmem:[%s3660_s6] sm:$0x3]  ;;  %s2845_s6 = smov 96  }
0x1174   :  { %1294 = vmatpush1.msra.mxu1 %v1194_v15 }
0x1175   :  { %1295 = vmatprep.subr.mxu1 %v1193_v18 }
0x11c4   :  { %v1115_v21 = vpop.permute.xlu1 %1114 }
0x11c5   :  { %v1117_v56 = vmul.f32 %v2578_v19, %v1115_v21  ;;  %v1192_v19 = vld [vmem:[#allocation5 + $0x20] sm:$0xff]  ;;  %v1191_v21 = vld [vmem:[#allocation5 + $0x18] sm:$0xff] }
0x11c6   :  { %1296 = vmatpush1.msra.mxu1 %v1192_v19  ;;  %v1266_v19 = vrot.slane %v1236_v44, %v171_v51 }
0x11c7   :  { %1119 = vrot.lane.b32.xlu0 %v1117_v56, %s2844_s14  ;;  %v1190_v56 = vld [vmem:[#allocation5 + $0x10] sm:$0xff]  ;;  %1297 = vmatprep.subr.mxu1 %v1191_v21  ;;  %v1409_v21 = vpop.f32.mrf.mxu0 }
0x11c8   :  { %1298 = vmatpush1.msra.mxu1 %v1190_v56 }
0x1239   :  { %v1120_v22 = vpop.permute.xlu0 %1119 }
0x123a   :  { %v3341_v23 = vadd.f32 %v1120_v22, %v1112_v58  ;;  %v1189_v58 = vld [vmem:[#allocation5 + $0x8] sm:$0xff]  ;;  %v2419_v22 = vmul.f32 -1.442695, %v3335_v6  ;;  %v1172_v6 = vrot.slane %v3187_v16, 4 }
0x123b   :  { %1299 = vmatprep.subr.mxu1 %v1189_v58 }
0x123c   :  { %2579 = vtanh.f32 %v3341_v23  ;;  %1300 = vmatpush1.msra.mxu1 %v1188_v52 }
0x123d   :  { %2581 = vpow2.f32 %v2419_v22  ;;  %1581 = vmatprep.subr.mxu1 %v3255_v47 }
0x1249   :  { %v2580_v26 = vpop.eup %2579 }
0x124a   :  { %1125 = vrot.lane.b32.xlu1 %v2580_v26, %s2844_s14  ;;  %v2582_v26 = vpop.eup %2581 }
0x124b   :  { %v1106_v27 = vadd.f32 1.0, %v2582_v26  ;;  %v1411_v26 = vpop.f32.mrf.mxu0 }
0x124d   :  { %2583 = vrcp.f32 %v1106_v27 }
0x125a   :  { %v2584_v29 = vpop.eup %2583 }
0x12bc   :  { %v1126_v31 = vpop.permute.xlu1 %1125 }
0x12bd   :  { %v3347_v33 = vmul.f32 %v2584_v29, %v1126_v31  ;;  %v1262_v31 = vrot.slane %v1236_v44, %v167_v49 }
0x12bf   :  { %v1180_v42 = vsel %vm144_vm0, %v3347_v33, %v1166_v32  ;;  %1130 = vst.msk [vmem:[#allocation11] sm:$0x1] %vm1129_vm10, %v3347_v33  ;;  %v1157_v59 = vrot.slane %v3347_v33, 1 }
0x12c0   :  { %v1181_v43 = vsel %vm146_vm1, %v1180_v42, %v1168_v35 }
0x12c1   :  { %v1182_v50 = vsel %vm148_vm2, %v1181_v43, %v1170_v41  ;;  %v1165_v36 = vsel %vm156_vm6, %v3275_v11, %v1157_v59 }
0x12c2   :  { %v1183_v60 = vsel %vm150_vm3, %v1182_v50, %v1172_v6 }
0x12c3   :  { %v1184_v54 = vsel %vm152_vm4, %v1183_v60, %v1174_v45 }
0x12c4   :  { %v1185_v16 = vsel %vm154_vm5, %v1184_v54, %v1176_v12 }
0x12c5   :  { %v1186_v55 = vsel %vm156_vm6, %v1185_v16, %v1178_v53 }
0x12c6   :  { %v1187_v57 = vsel %vm175_vm8, %v1165_v36, %v1186_v55 }
0x12c7   :  { %v1238_v62 = vrot.slane %v1187_v57, 7  ;;  %v1240_v7 = vrot.slane %v1187_v57, 5  ;;  %v1242_v2 = vrot.slane %v1187_v57, 3  ;;  %v1244_v46 = vrot.slane %v1187_v57, 1 }
0x12c9   :  { %v1246_v25 = vsel %vm144_vm0, %v1238_v62, %v1240_v7 }
0x12ca   :  { %v1247_v1 = vsel %vm146_vm1, %v1246_v25, %v1242_v2 }
0x12cb   :  { %v1248_v3 = vsel %vm148_vm2, %v1247_v1, %v1244_v46 }
0x12cc   :  { %v1249_v4 = vsel %vm150_vm3, %v1248_v3, %v1238_v62 }
0x12cd   :  { %v1250_v5 = vsel %vm152_vm4, %v1249_v4, %v1240_v7 }
0x12ce   :  { %v1251_v11 = vsel %vm154_vm5, %v1250_v5, %v1242_v2 }
0x12cf   :  { %v1252_v10 = vsel %vm156_vm6, %v1251_v11, %v1244_v46 }
0x12d0   :  { %1254 = vrot.lane.b32.xlu0 %v1252_v10, %s2844_s14 }
0x12d4   :  { %1428 = vrot.lane.b32.xlu0 %v1427_v13, %s2844_s14 }
0x1342   :  { %v1255_v15 = vpop.permute.xlu0 %1254 }
0x1343   :  { %v1257_v18 = vsel %vm262_vm9, %v1187_v57, %v1255_v15 }
0x1344   :  { %1334 = vmatmul.mubr.f32.vlgmr.msra.gmra.mxu1 %v1257_v18 }
0x1345   :  { %1582 = vmatpush1.msra.mxu1 %v3261_v61  ;;  %1629 = vmatprep.mubr.f32.mxu1 %v2842_v0 }
0x1346   :  { %1583 = vmatprep.subr.mxu1 %v3263_v63  ;;  %v1429_v59 = vpop.permute.xlu0 %1428 }
0x1347   :  { %1584 = vmatpush1.msra.mxu1 %v3268_v8 }
0x1348   :  { %1585 = vmatprep.subr.mxu1 %v3271_v9 }
0x1349   :  { %1586 = vmatpush1.msra.mxu1 %v3278_v14 }
0x134a   :  { %1587 = vmatprep.subr.mxu1 %v3281_v17 }
0x134b   :  { %1588 = vmatpush1.msra.mxu1 %v3284_v20 }
0x134c   :  { %1589 = vmatprep.subr.mxu1 %v3287_v24 }
0x134d   :  { %1590 = vmatpush1.msra.mxu1 %v3290_v28 }
0x134e   :  { %1591 = vmatprep.subr.mxu1 %v3293_v30 }
0x134f   :  { %1592 = vmatpush1.msra.mxu1 %v3296_v34 }
0x1350   :  { %1593 = vmatprep.subr.mxu1 %v3299_v37 }
0x1351   :  { %1594 = vmatpush1.msra.mxu1 %v3302_v38 }
0x1352   :  { %1595 = vmatprep.subr.mxu1 %v3305_v39 }
0x1353   :  { %1596 = vmatpush1.msra.mxu1 %v3308_v40 }
0x1354   :  { %1797 = vmatprep.subr.mxu1 %v3255_v47 }
0x1404   :  { %v1335_v56 = vpop.f32.mrf.mxu1 }
0x1405   :  { %v3409_v32 = vadd.f32 %v1335_v56, %v1262_v31 }
0x1406   :  { %v1337_v58 = vpop.f32.mrf.mxu1 }
0x1407   :  { %v3403_v22 = vadd.f32 %v1337_v58, %v1266_v19  ;;  %v1410_v35 = vadd.f32 %v1409_v21, %v3409_v32  ;;  %v1450_v55 = vrot.slane %v3409_v32, 1 }
0x1409   :  { %v1412_v27 = vadd.f32 %v1411_v26, %v3403_v22  ;;  %v2421_v51 = vmul.f32 -1.442695, %v1410_v35  ;;  %v1451_v7 = vrot.slane %v3403_v22, 1 }
0x140b   :  { %2585 = vtanh.f32 %v1412_v27  ;;  %v2422_v49 = vmul.f32 -1.442695, %v1412_v27 }
0x140c   :  { %2587 = vpow2.f32 %v2421_v51  ;;  %v1559_v51 = vrot.slane %v3403_v22, 2 }
0x1418   :  { %v2586_v29 = vpop.eup %2585 }
0x1419   :  { %1433 = vrot.lane.b32.xlu1 %v2586_v29, %s2844_s14  ;;  %v2588_v41 = vpop.eup %2587  ;;  %v1558_v29 = vrot.slane %v3409_v32, 2 }
0x141a   :  { %v1420_v42 = vadd.f32 1.0, %v2588_v41 }
0x141c   :  { %2589 = vrcp.f32 %v1420_v42 }
0x1429   :  { %v2590_v6 = vpop.eup %2589 }
0x142a   :  { %v1431_v50 = vmul.f32 %v2590_v6, %v1429_v59 }
0x148b   :  { %v1434_v43 = vpop.permute.xlu1 %1433 }
0x148c   :  { %v1436_v45 = vmul.f32 %v2590_v6, %v1434_v43 }
0x148e   :  { %1438 = vrot.lane.b32.xlu1 %v1436_v45, %s2844_s14 }
0x1500   :  { %v1439_v12 = vpop.permute.xlu1 %1438 }
0x1501   :  { %v1441_v60 = vadd.f32 %v1439_v12, %v1431_v50 }
0x1503   :  { %2591 = vtanh.f32 %v1441_v60 }
0x1504   :  { %2593 = vpow2.f32 %v2422_v49 }
0x1510   :  { %v2592_v48 = vpop.eup %2591 }
0x1511   :  { %1444 = vrot.lane.b32.xlu0 %v2592_v48, %s2844_s14  ;;  %v2594_v52 = vpop.eup %2593 }
0x1512   :  { %v1421_v53 = vadd.f32 1.0, %v2594_v52 }
0x1514   :  { %2595 = vrcp.f32 %v1421_v53 }
0x1521   :  { %v2596_v54 = vpop.eup %2595 }
0x1583   :  { %v1445_v16 = vpop.permute.xlu0 %1444 }
0x1584   :  { %v3414_v36 = vmul.f32 %v2596_v54, %v1445_v16 }
0x1586   :  { %2423 = vmatmul.mubr.msk.f32.vlgmr.msra.gmra.mxu0 %vm262_vm9, %v3414_v36 }
0x1587   :  { %1690 = vmatpush1.msra.mxu0 %v3261_v61  ;;  %1737 = vmatprep.mubr.f32.mxu0 %v2842_v0 }
0x1588   :  { %1691 = vmatprep.subr.mxu0 %v3263_v63 }
0x1589   :  { %1692 = vmatpush1.msra.mxu0 %v3268_v8 }
0x158a   :  { %1693 = vmatprep.subr.mxu0 %v3271_v9 }
0x158b   :  { %1694 = vmatpush1.msra.mxu0 %v3278_v14 }
0x158c   :  { %1695 = vmatprep.subr.mxu0 %v3281_v17 }
0x158d   :  { %1696 = vmatpush1.msra.mxu0 %v3284_v20 }
0x158e   :  { %1697 = vmatprep.subr.mxu0 %v3287_v24 }
0x158f   :  { %1698 = vmatpush1.msra.mxu0 %v3290_v28 }
0x1590   :  { %1699 = vmatprep.subr.mxu0 %v3293_v30 }
0x1591   :  { %1700 = vmatpush1.msra.mxu0 %v3296_v34 }
0x1592   :  { %1701 = vmatprep.subr.mxu0 %v3299_v37 }
0x1593   :  { %1702 = vmatpush1.msra.mxu0 %v3302_v38 }
0x1594   :  { %1703 = vmatprep.subr.mxu0 %v3305_v39 }
0x1595   :  { %1704 = vmatpush1.msra.mxu0 %v3308_v40 }
0x1596   :  { %1905 = vmatprep.subr.mxu0 %v3255_v47 }
0x1646   :  { %v1523_v57 = vpop.f32.mrf.mxu0 }
0x1647   :  { %v1524_v62 = vadd.f32 %v1523_v57, %v1450_v55 }
0x1648   :  { %v1525_v2 = vpop.f32.mrf.mxu0 }
0x1649   :  { %v1526_v46 = vadd.f32 %v1525_v2, %v1451_v7  ;;  %v2424_v1 = vmul.f32 -1.442695, %v1524_v62 }
0x164b   :  { %2597 = vtanh.f32 %v1526_v46  ;;  %v2425_v19 = vmul.f32 -1.442695, %v1526_v46 }
0x164c   :  { %2599 = vpow2.f32 %v2424_v1 }
0x1658   :  { %v2598_v25 = vpop.eup %2597 }
0x1659   :  { %1543 = vrot.lane.b32.xlu1 %v2598_v25, %s2844_s14  ;;  %v2600_v3 = vpop.eup %2599 }
0x165a   :  { %v1534_v4 = vadd.f32 1.0, %v2600_v3  ;;  %v1666_v3 = vrot.slane %v3409_v32, 3 }
0x165c   :  { %2601 = vrcp.f32 %v1534_v4 }
0x1669   :  { %v2602_v5 = vpop.eup %2601 }
0x166a   :  { %v1541_v13 = vmul.f32 %v2602_v5, %v1441_v60 }
0x16cb   :  { %v1544_v11 = vpop.permute.xlu1 %1543 }
0x16cc   :  { %v1546_v10 = vmul.f32 %v2602_v5, %v1544_v11  ;;  %v1667_v11 = vrot.slane %v3403_v22, 3 }
0x16ce   :  { %1548 = vrot.lane.b32.xlu0 %v1546_v10, %s2844_s14 }
0x1740   :  { %v1549_v15 = vpop.permute.xlu0 %1548 }
0x1741   :  { %v1551_v18 = vadd.f32 %v1549_v15, %v1541_v13 }
0x1743   :  { %2603 = vtanh.f32 %v1551_v18 }
0x1744   :  { %2605 = vpow2.f32 %v2425_v19 }
0x1750   :  { %v2604_v44 = vpop.eup %2603 }
0x1751   :  { %1554 = vrot.lane.b32.xlu1 %v2604_v44, %s2844_s14  ;;  %v2606_v21 = vpop.eup %2605 }
0x1752   :  { %v1535_v56 = vadd.f32 1.0, %v2606_v21 }
0x1754   :  { %2607 = vrcp.f32 %v1535_v56 }
0x1761   :  { %v2608_v58 = vpop.eup %2607 }
0x17c3   :  { %v1555_v26 = vpop.permute.xlu1 %1554 }
0x17c4   :  { %v3440_v27 = vmul.f32 %v2608_v58, %v1555_v26 }
0x17c6   :  { %2426 = vmatmul.mubr.msk.f32.vlgmr.msra.gmra.mxu1 %vm262_vm9, %v3440_v27  ;;  %v2221_v62 = vrot.slane %v3440_v27, 7 }
0x17c7   :  { %1798 = vmatpush1.msra.mxu1 %v3261_v61  ;;  %1845 = vmatprep.mubr.f32.mxu1 %v2842_v0 }
0x17c8   :  { %1799 = vmatprep.subr.mxu1 %v3263_v63  ;;  %v2235_v25 = vsel %vm144_vm0, %v3414_v36, %v2221_v62 }
0x17c9   :  { %1800 = vmatpush1.msra.mxu1 %v3268_v8 }
0x17ca   :  { %1801 = vmatprep.subr.mxu1 %v3271_v9 }
0x17cb   :  { %1802 = vmatpush1.msra.mxu1 %v3278_v14 }
0x17cc   :  { %1803 = vmatprep.subr.mxu1 %v3281_v17 }
0x17cd   :  { %1804 = vmatpush1.msra.mxu1 %v3284_v20 }
0x17ce   :  { %1805 = vmatprep.subr.mxu1 %v3287_v24 }
0x17cf   :  { %1806 = vmatpush1.msra.mxu1 %v3290_v28 }
0x17d0   :  { %1807 = vmatprep.subr.mxu1 %v3293_v30 }
0x17d1   :  { %1808 = vmatpush1.msra.mxu1 %v3296_v34 }
0x17d2   :  { %1809 = vmatprep.subr.mxu1 %v3299_v37 }
0x17d3   :  { %1810 = vmatpush1.msra.mxu1 %v3302_v38 }
0x17d4   :  { %1811 = vmatprep.subr.mxu1 %v3305_v39 }
0x17d5   :  { %1812 = vmatpush1.msra.mxu1 %v3308_v40 }
0x17d6   :  { %2013 = vmatprep.subr.mxu1 %v3255_v47 }
0x1886   :  { %v1631_v31 = vpop.f32.mrf.mxu1 }
0x1887   :  { %v1632_v35 = vadd.f32 %v1631_v31, %v1558_v29 }
0x1888   :  { %v1633_v41 = vpop.f32.mrf.mxu1 }
0x1889   :  { %v1634_v42 = vadd.f32 %v1633_v41, %v1559_v51  ;;  %v2427_v43 = vmul.f32 -1.442695, %v1632_v35 }
0x188b   :  { %2609 = vtanh.f32 %v1634_v42  ;;  %v2428_v54 = vmul.f32 -1.442695, %v1634_v42 }
0x188c   :  { %2611 = vpow2.f32 %v2427_v43 }
0x1898   :  { %v2610_v6 = vpop.eup %2609 }
0x1899   :  { %1651 = vrot.lane.b32.xlu0 %v2610_v6, %s2844_s14  ;;  %v2612_v45 = vpop.eup %2611 }
0x189a   :  { %v1642_v59 = vadd.f32 1.0, %v2612_v45 }
0x189c   :  { %2613 = vrcp.f32 %v1642_v59 }
0x18a9   :  { %v2614_v50 = vpop.eup %2613 }
0x18aa   :  { %v1649_v48 = vmul.f32 %v2614_v50, %v1551_v18 }
0x190b   :  { %v1652_v12 = vpop.permute.xlu0 %1651 }
0x190c   :  { %v1654_v60 = vmul.f32 %v2614_v50, %v1652_v12  ;;  %v1774_v50 = vrot.slane %v3409_v32, 4 }
0x190e   :  { %1656 = vrot.lane.b32.xlu1 %v1654_v60, %s2844_s14 }
0x1980   :  { %v1657_v49 = vpop.permute.xlu1 %1656 }
0x1981   :  { %v1659_v52 = vadd.f32 %v1657_v49, %v1649_v48  ;;  %v1775_v48 = vrot.slane %v3403_v22, 4 }
0x1983   :  { %2615 = vtanh.f32 %v1659_v52 }
0x1984   :  { %2617 = vpow2.f32 %v2428_v54 }
0x1990   :  { %v2616_v53 = vpop.eup %2615 }
0x1991   :  { %1662 = vrot.lane.b32.xlu0 %v2616_v53, %s2844_s14  ;;  %v2618_v16 = vpop.eup %2617 }
0x1992   :  { %v1643_v55 = vadd.f32 1.0, %v2618_v16 }
0x1994   :  { %2619 = vrcp.f32 %v1643_v55 }
0x19a1   :  { %v2620_v57 = vpop.eup %2619 }
0x1a03   :  { %v1663_v7 = vpop.permute.xlu0 %1662 }
0x1a04   :  { %v3467_v2 = vmul.f32 %v2620_v57, %v1663_v7 }
0x1a06   :  { %v2223_v46 = vrot.slane %v3467_v2, 6  ;;  %2429 = vmatmul.mubr.msk.f32.vlgmr.msra.gmra.mxu0 %vm262_vm9, %v3467_v2 }
0x1a07   :  { %1906 = vmatpush1.msra.mxu0 %v3261_v61  ;;  %1953 = vmatprep.mubr.f32.mxu0 %v2842_v0 }
0x1a08   :  { %v2236_v1 = vsel %vm146_vm1, %v2235_v25, %v2223_v46  ;;  %1907 = vmatprep.subr.mxu0 %v3263_v63 }
0x1a09   :  { %1908 = vmatpush1.msra.mxu0 %v3268_v8 }
0x1a0a   :  { %1909 = vmatprep.subr.mxu0 %v3271_v9 }
0x1a0b   :  { %1910 = vmatpush1.msra.mxu0 %v3278_v14 }
0x1a0c   :  { %1911 = vmatprep.subr.mxu0 %v3281_v17 }
0x1a0d   :  { %1912 = vmatpush1.msra.mxu0 %v3284_v20 }
0x1a0e   :  { %1913 = vmatprep.subr.mxu0 %v3287_v24 }
0x1a0f   :  { %1914 = vmatpush1.msra.mxu0 %v3290_v28 }
0x1a10   :  { %1915 = vmatprep.subr.mxu0 %v3293_v30 }
0x1a11   :  { %1916 = vmatpush1.msra.mxu0 %v3296_v34 }
0x1a12   :  { %1917 = vmatprep.subr.mxu0 %v3299_v37 }
0x1a13   :  { %1918 = vmatpush1.msra.mxu0 %v3302_v38 }
0x1a14   :  { %1919 = vmatprep.subr.mxu0 %v3305_v39 }
0x1a15   :  { %1920 = vmatpush1.msra.mxu0 %v3308_v40 }
0x1a16   :  { %2121 = vmatprep.subr.mxu0 %v3255_v47 }
0x1ac6   :  { %v1739_v4 = vpop.f32.mrf.mxu0 }
0x1ac7   :  { %v1740_v5 = vadd.f32 %v1739_v4, %v1666_v3 }
0x1ac8   :  { %v1741_v10 = vpop.f32.mrf.mxu0 }
0x1ac9   :  { %v1742_v13 = vadd.f32 %v1741_v10, %v1667_v11  ;;  %v2430_v18 = vmul.f32 -1.442695, %v1740_v5 }
0x1acb   :  { %2621 = vtanh.f32 %v1742_v13  ;;  %v2431_v35 = vmul.f32 -1.442695, %v1742_v13 }
0x1acc   :  { %2623 = vpow2.f32 %v2430_v18 }
0x1ad8   :  { %v2622_v15 = vpop.eup %2621 }
0x1ad9   :  { %1759 = vrot.lane.b32.xlu1 %v2622_v15, %s2844_s14  ;;  %v2624_v44 = vpop.eup %2623 }
0x1ada   :  { %v1750_v19 = vadd.f32 1.0, %v2624_v44 }
0x1adc   :  { %2625 = vrcp.f32 %v1750_v19 }
0x1ae9   :  { %v2626_v21 = vpop.eup %2625 }
0x1aea   :  { %v1757_v58 = vmul.f32 %v2626_v21, %v1659_v52 }
0x1b4b   :  { %v1760_v56 = vpop.permute.xlu1 %1759 }
0x1b4c   :  { %v1762_v47 = vmul.f32 %v2626_v21, %v1760_v56 }
0x1b4e   :  { %1764 = vrot.lane.b32.xlu0 %v1762_v47, %s2844_s14 }
0x1bc0   :  { %v1765_v26 = vpop.permute.xlu0 %1764 }
0x1bc1   :  { %v1767_v29 = vadd.f32 %v1765_v26, %v1757_v58 }
0x1bc3   :  { %2627 = vtanh.f32 %v1767_v29 }
0x1bc4   :  { %2629 = vpow2.f32 %v2431_v35 }
0x1bd0   :  { %v2628_v31 = vpop.eup %2627 }
0x1bd1   :  { %1770 = vrot.lane.b32.xlu1 %v2628_v31, %s2844_s14  ;;  %v2630_v51 = vpop.eup %2629 }
0x1bd2   :  { %v1751_v41 = vadd.f32 1.0, %v2630_v51 }
0x1bd4   :  { %2631 = vrcp.f32 %v1751_v41  ;;  %v1990_v41 = vrot.slane %v3409_v32, 6 }
0x1be1   :  { %v2632_v42 = vpop.eup %2631 }
0x1c43   :  { %v1771_v6 = vpop.permute.xlu1 %1770 }
0x1c44   :  { %v3497_v43 = vmul.f32 %v2632_v42, %v1771_v6 }
0x1c46   :  { %v2225_v45 = vrot.slane %v3497_v43, 5  ;;  %2432 = vmatmul.mubr.msk.f32.vlgmr.msra.gmra.mxu1 %vm262_vm9, %v3497_v43 }
0x1c47   :  { %2014 = vmatpush1.msra.mxu1 %v3261_v61  ;;  %2061 = vmatprep.mubr.f32.mxu1 %v2842_v0 }
0x1c48   :  { %v2237_v59 = vsel %vm148_vm2, %v2236_v1, %v2225_v45  ;;  %2015 = vmatprep.subr.mxu1 %v3263_v63  ;;  %v1991_v45 = vrot.slane %v3403_v22, 6 }
0x1c49   :  { %2016 = vmatpush1.msra.mxu1 %v3268_v8 }
0x1c4a   :  { %2017 = vmatprep.subr.mxu1 %v3271_v9 }
0x1c4b   :  { %2018 = vmatpush1.msra.mxu1 %v3278_v14 }
0x1c4c   :  { %2019 = vmatprep.subr.mxu1 %v3281_v17 }
0x1c4d   :  { %2020 = vmatpush1.msra.mxu1 %v3284_v20 }
0x1c4e   :  { %2021 = vmatprep.subr.mxu1 %v3287_v24 }
0x1c4f   :  { %2022 = vmatpush1.msra.mxu1 %v3290_v28 }
0x1c50   :  { %2023 = vmatprep.subr.mxu1 %v3293_v30 }
0x1c51   :  { %2024 = vmatpush1.msra.mxu1 %v3296_v34 }
0x1c52   :  { %2025 = vmatprep.subr.mxu1 %v3299_v37 }
0x1c53   :  { %2026 = vmatpush1.msra.mxu1 %v3302_v38 }
0x1c54   :  { %2027 = vmatprep.subr.mxu1 %v3305_v39 }
0x1c55   :  { %2028 = vmatpush1.msra.mxu1 %v3308_v40 }
0x1c56   :  { %2456 = vmatprep.subr.mxu1 %v2842_v0 }
0x1d06   :  { %v1847_v12 = vpop.f32.mrf.mxu1 }
0x1d07   :  { %v1848_v60 = vadd.f32 %v1847_v12, %v1774_v50 }
0x1d08   :  { %v1849_v49 = vpop.f32.mrf.mxu1 }
0x1d09   :  { %v1850_v52 = vadd.f32 %v1849_v49, %v1775_v48  ;;  %v2433_v54 = vmul.f32 -1.442695, %v1848_v60 }
0x1d0b   :  { %2633 = vtanh.f32 %v1850_v52  ;;  %v2434_v4 = vmul.f32 -1.442695, %v1850_v52 }
0x1d0c   :  { %2635 = vpow2.f32 %v2433_v54 }
0x1d18   :  { %v2634_v53 = vpop.eup %2633 }
0x1d19   :  { %1867 = vrot.lane.b32.xlu0 %v2634_v53, %s2844_s14  ;;  %v2636_v16 = vpop.eup %2635 }
0x1d1a   :  { %v1858_v55 = vadd.f32 1.0, %v2636_v16 }
0x1d1c   :  { %2637 = vrcp.f32 %v1858_v55 }
0x1d29   :  { %v2638_v57 = vpop.eup %2637 }
0x1d2a   :  { %v1865_v46 = vmul.f32 %v2638_v57, %v1767_v29 }
0x1d8b   :  { %v1868_v62 = vpop.permute.xlu0 %1867 }
0x1d8c   :  { %v1870_v7 = vmul.f32 %v2638_v57, %v1868_v62 }
0x1d8e   :  { %1872 = vrot.lane.b32.xlu1 %v1870_v7, %s2844_s14 }
0x1e00   :  { %v1873_v25 = vpop.permute.xlu1 %1872 }
0x1e01   :  { %v1875_v1 = vadd.f32 %v1873_v25, %v1865_v46 }
0x1e03   :  { %2639 = vtanh.f32 %v1875_v1 }
0x1e04   :  { %2641 = vpow2.f32 %v2434_v4 }
0x1e10   :  { %v2640_v3 = vpop.eup %2639 }
0x1e11   :  { %1878 = vrot.lane.b32.xlu0 %v2640_v3, %s2844_s14  ;;  %v2642_v5 = vpop.eup %2641 }
0x1e12   :  { %v1859_v11 = vadd.f32 1.0, %v2642_v5 }
0x1e14   :  { %2643 = vrcp.f32 %v1859_v11 }
0x1e21   :  { %v2644_v10 = vpop.eup %2643 }
0x1e83   :  { %v1879_v13 = vpop.permute.xlu0 %1878 }
0x1e84   :  { %v3525_v15 = vmul.f32 %v2644_v10, %v1879_v13  ;;  %v2098_v10 = vrot.slane %v3409_v32, 7 }
0x1e86   :  { %v2227_v18 = vrot.slane %v3525_v15, 4  ;;  %2435 = vmatmul.mubr.msk.f32.vlgmr.msra.gmra.mxu0 %vm262_vm9, %v3525_v15 }
0x1e87   :  { %2122 = vmatpush1.msra.mxu0 %v3261_v61  ;;  %2169 = vmatprep.mubr.f32.mxu0 %v2842_v0  ;;  %v1882_v61 = vrot.slane %v3409_v32, 5  ;;  %v2270_v32 = vld [vmem:[%s3661_s7 + $0x30] sm:$0xff] }
0x1e88   :  { %v2238_v44 = vsel %vm150_vm3, %v2237_v59, %v2227_v18  ;;  %2123 = vmatprep.subr.mxu0 %v3263_v63 }
0x1e89   :  { %2124 = vmatpush1.msra.mxu0 %v3268_v8 }
0x1e8a   :  { %2125 = vmatprep.subr.mxu0 %v3271_v9  ;;  %v1883_v9 = vrot.slane %v3403_v22, 5 }
0x1e8b   :  { %2126 = vmatpush1.msra.mxu0 %v3278_v14 }
0x1e8c   :  { %2127 = vmatprep.subr.mxu0 %v3281_v17 }
0x1e8d   :  { %2128 = vmatpush1.msra.mxu0 %v3284_v20 }
0x1e8e   :  { %2129 = vmatprep.subr.mxu0 %v3287_v24 }
0x1e8f   :  { %2130 = vmatpush1.msra.mxu0 %v3290_v28 }
0x1e90   :  { %2131 = vmatprep.subr.mxu0 %v3293_v30 }
0x1e91   :  { %2132 = vmatpush1.msra.mxu0 %v3296_v34 }
0x1e92   :  { %2133 = vmatprep.subr.mxu0 %v3299_v37 }
0x1e93   :  { %2134 = vmatpush1.msra.mxu0 %v3302_v38 }
0x1e94   :  { %2135 = vmatprep.subr.mxu0 %v3305_v39 }
0x1e95   :  { %2136 = vmatpush1.msra.mxu0 %v3308_v40 }
0x1f46   :  { %v1955_v63 = vpop.f32.mrf.mxu0 }
0x1f47   :  { %v1956_v8 = vadd.f32 %v1955_v63, %v1882_v61 }
0x1f48   :  { %v1957_v14 = vpop.f32.mrf.mxu0 }
0x1f49   :  { %v1958_v17 = vadd.f32 %v1957_v14, %v1883_v9  ;;  %v2436_v24 = vmul.f32 -1.442695, %v1956_v8 }
0x1f4b   :  { %2645 = vtanh.f32 %v1958_v17  ;;  %v2437_v56 = vmul.f32 -1.442695, %v1958_v17 }
0x1f4c   :  { %2647 = vpow2.f32 %v2436_v24 }
0x1f58   :  { %v2646_v20 = vpop.eup %2645 }
0x1f59   :  { %1975 = vrot.lane.b32.xlu1 %v2646_v20, %s2844_s14  ;;  %v2648_v28 = vpop.eup %2647 }
0x1f5a   :  { %v1966_v30 = vadd.f32 1.0, %v2648_v28 }
0x1f5c   :  { %2649 = vrcp.f32 %v1966_v30  ;;  %v2269_v30 = vld [vmem:[%s3661_s7 + $0x28] sm:$0xff] }
0x1f69   :  { %v2650_v34 = vpop.eup %2649 }
0x1f6a   :  { %v1973_v39 = vmul.f32 %v2650_v34, %v1875_v1 }
0x1fcb   :  { %v1976_v37 = vpop.permute.xlu1 %1975 }
0x1fcc   :  { %v1978_v38 = vmul.f32 %v2650_v34, %v1976_v37 }
0x1fce   :  { %1980 = vrot.lane.b32.xlu0 %v1978_v38, %s2844_s14 }
0x2040   :  { %v1981_v40 = vpop.permute.xlu0 %1980 }
0x2041   :  { %v1983_v19 = vadd.f32 %v1981_v40, %v1973_v39  ;;  %v2268_v39 = vld [vmem:[%s3661_s7 + $0x20] sm:$0xff]  ;;  %v2267_v40 = vld [vmem:[%s3661_s7 + $0x18] sm:$0xff] }
0x2043   :  { %2651 = vtanh.f32 %v1983_v19 }
0x2044   :  { %2653 = vpow2.f32 %v2437_v56  ;;  %v2265_v56 = vld [vmem:[%s3661_s7 + $0x8] sm:$0xff] }
0x2050   :  { %v2652_v21 = vpop.eup %2651 }
0x2051   :  { %1986 = vrot.lane.b32.xlu1 %v2652_v21, %s2844_s14  ;;  %v2654_v47 = vpop.eup %2653  ;;  %v2266_v21 = vld [vmem:[%s3661_s7 + $0x10] sm:$0xff] }
0x2052   :  { %v1967_v58 = vadd.f32 1.0, %v2654_v47  ;;  %v2264_v47 = vld [vmem:[%s3661_s7] sm:$0xff] }
0x2054   :  { %2655 = vrcp.f32 %v1967_v58 }
0x2061   :  { %v2656_v26 = vpop.eup %2655 }
0x20c3   :  { %v1987_v29 = vpop.permute.xlu1 %1986 }
0x20c4   :  { %v3552_v31 = vmul.f32 %v2656_v26, %v1987_v29 }
0x20c6   :  { %v2229_v35 = vrot.slane %v3552_v31, 3  ;;  %2438 = vmatmul.mubr.msk.f32.vlgmr.msra.gmra.mxu1 %vm262_vm9, %v3552_v31 }
0x20c7   :  { %2472 = vmatprep.mubr.msk.f32.mxu1 %vm2846_vm11, %v2842_v0 }
0x20c8   :  { %v2239_v51 = vsel %vm152_vm4, %v2238_v44, %v2229_v35  ;;  %v2099_v44 = vrot.slane %v3403_v22, 7  ;;  %v2271_v22 = vld [vmem:[%s3661_s7 + $0x38] sm:$0xff]  ;;  %s2847_s7 = smov [#allocation11]  }
0x20c9   :  { %2457 = vmatpush3.msra.mxu1 %v2271_v22  ;;  %s2368_s26 = sshll.u32 %s2847_s7, 4  ;;  %s2369_s26 = int_to_ptr.vmem [resolvable:$true] %s2368_s26 }
0x20ca   :  { %2458 = vmatprep.subr.mxu1 %v2842_v0  ;;  %p2790_p12 = scmp.lt.s32.totalorder %s2369_s26, %s2369_s26 }
0x20cb   :  { %2459 = vmatpush3.msra.mxu1 %v2270_v32 }
0x20cc   :  { %2460 = vmatprep.subr.mxu1 %v2842_v0 }
0x20cd   :  { %2461 = vmatpush3.msra.mxu1 %v2269_v30 }
0x20ce   :  { %2462 = vmatprep.subr.mxu1 %v2842_v0 }
0x20cf   :  { %2463 = vmatpush3.msra.mxu1 %v2268_v39 }
0x20d0   :  { %2464 = vmatprep.subr.mxu1 %v2842_v0 }
0x20d1   :  { %2465 = vmatpush3.msra.mxu1 %v2267_v40 }
0x20d2   :  { %2466 = vmatprep.subr.mxu1 %v2842_v0 }
0x20d3   :  { %2467 = vmatpush3.msra.mxu1 %v2266_v21 }
0x20d4   :  { %2468 = vmatprep.subr.mxu1 %v2842_v0 }
0x20d5   :  { %2469 = vmatpush3.msra.mxu1 %v2265_v56 }
0x20d6   :  { %2470 = vmatprep.subr.mxu1 %v2842_v0 }
0x20d7   :  { %2471 = vmatpush3.msra.mxu1 %v2264_v47 }
0x2186   :  { %v2063_v42 = vpop.f32.mrf.mxu1 }
0x2187   :  { %v2064_v6 = vadd.f32 %v2063_v42, %v1990_v41 }
0x2188   :  { %v2065_v59 = vpop.f32.mrf.mxu1 }
0x2189   :  { %v2066_v50 = vadd.f32 %v2065_v59, %v1991_v45  ;;  %v2439_v60 = vmul.f32 -1.442695, %v2064_v6  ;;  %v2244_v45 = vrot.slane %v3552_v31, 6  ;;  %v2246_v59 = vrot.slane %v3525_v15, 5 }
0x218a   :  { %v2252_v31 = vrot.slane %v3440_v27, 2 }
0x218b   :  { %2657 = vtanh.f32 %v2066_v50  ;;  %v2440_v7 = vmul.f32 -1.442695, %v2066_v50 }
0x218c   :  { %2659 = vpow2.f32 %v2439_v60 }
0x2198   :  { %v2658_v12 = vpop.eup %2657 }
0x2199   :  { %2083 = vrot.lane.b32.xlu0 %v2658_v12, %s2844_s14  ;;  %v2660_v48 = vpop.eup %2659  ;;  %v2248_v12 = vrot.slane %v3497_v43, 4 }
0x219a   :  { %v2074_v49 = vadd.f32 1.0, %v2660_v48 }
0x219c   :  { %2661 = vrcp.f32 %v2074_v49  ;;  %v2250_v49 = vrot.slane %v3467_v2, 3 }
0x21a9   :  { %v2662_v52 = vpop.eup %2661 }
0x21aa   :  { %v2081_v16 = vmul.f32 %v2662_v52, %v1983_v19 }
0x220b   :  { %v2084_v53 = vpop.permute.xlu0 %2083 }
0x220c   :  { %v2086_v54 = vmul.f32 %v2662_v52, %v2084_v53 }
0x220e   :  { %2088 = vrot.lane.b32.xlu1 %v2086_v54, %s2844_s14  ;;  %v2254_v54 = vrot.slane %v3414_v36, 1 }
0x2280   :  { %v2089_v55 = vpop.permute.xlu1 %2088 }
0x2281   :  { %v2091_v57 = vadd.f32 %v2089_v55, %v2081_v16 }
0x2283   :  { %2663 = vtanh.f32 %v2091_v57 }
0x2284   :  { %2665 = vpow2.f32 %v2440_v7 }
0x2290   :  { %v2664_v62 = vpop.eup %2663 }
0x2291   :  { %2094 = vrot.lane.b32.xlu0 %v2664_v62, %s2844_s14  ;;  %v2666_v46 = vpop.eup %2665 }
0x2292   :  { %v2075_v25 = vadd.f32 1.0, %v2666_v46 }
0x2294   :  { %2667 = vrcp.f32 %v2075_v25 }
0x22a1   :  { %v2668_v1 = vpop.eup %2667 }
0x2303   :  { %v2095_v3 = vpop.permute.xlu0 %2094 }
0x2304   :  { %v3563_v4 = vmul.f32 %v2668_v1, %v2095_v3 }
0x2306   :  { %v2231_v5 = vrot.slane %v3563_v4, 2  ;;  %2441 = vmatmul.mubr.msk.f32.vlgmr.msra.gmra.mxu0 %vm262_vm9, %v3563_v4  ;;  %v2242_v6 = vrot.slane %v3563_v4, 7 }
0x2308   :  { %v3569_v11 = vsel %vm154_vm5, %v2239_v51, %v2231_v5 }
0x23c6   :  { %v2171_v13 = vpop.f32.mrf.mxu0 }
0x23c7   :  { %v2172_v18 = vadd.f32 %v2171_v13, %v2098_v10 }
0x23c8   :  { %v2173_v61 = vpop.f32.mrf.mxu0 }
0x23c9   :  { %v2174_v63 = vadd.f32 %v2173_v61, %v2099_v44  ;;  %v2442_v9 = vmul.f32 -1.442695, %v2172_v18 }
0x23cb   :  { %2669 = vtanh.f32 %v2174_v63  ;;  %v2443_v26 = vmul.f32 -1.442695, %v2174_v63 }
0x23cc   :  { %2671 = vpow2.f32 %v2442_v9 }
0x23d8   :  { %v2670_v8 = vpop.eup %2669 }
0x23d9   :  { %2191 = vrot.lane.b32.xlu1 %v2670_v8, %s2844_s14  ;;  %v2672_v14 = vpop.eup %2671 }
0x23da   :  { %v2182_v17 = vadd.f32 1.0, %v2672_v14 }
0x23dc   :  { %2673 = vrcp.f32 %v2182_v17 }
0x23e9   :  { %v2674_v20 = vpop.eup %2673 }
0x244b   :  { %v2192_v24 = vpop.permute.xlu1 %2191 }
0x244c   :  { %v2194_v28 = vmul.f32 %v2674_v20, %v2192_v24 }
0x244e   :  { %2196 = vrot.lane.b32.xlu0 %v2194_v28, %s2844_s14 }
0x2452   :  { %1132 = vrot.lane.b32.xlu0 %v3347_v33, %s2845_s6  ;;  %v2189_v33 = vmul.f32 %v2674_v20, %v2091_v57 }
0x2456   :  { %1141 = vrot.lane.b32.xlu0 %v3341_v23, %s2843_s1 }
0x24c0   :  { %v2197_v34 = vpop.permute.xlu0 %2196 }
0x24c1   :  { %v2199_v37 = vadd.f32 %v2197_v34, %v2189_v33 }
0x24c3   :  { %2675 = vtanh.f32 %v2199_v37  ;;  %2213 = vrot.lane.b32.xlu0 %v2199_v37, %s2844_s14 }
0x24c4   :  { %v1133_v38 = vpop.permute.xlu0 %1132  ;;  %2677 = vpow2.f32 %v2443_v26 }
0x24c5   :  { %1135 = vst.msk [vmem:[#allocation11 + $0x1] sm:$0x1] %vm1129_vm10, %v1133_v38 }
0x24c8   :  { %v1142_v19 = vpop.permute.xlu0 %1141 }
0x24c9   :  { %1144 = vst.msk [vmem:[#allocation12 + $0x1] sm:$0x1] %vm1129_vm10, %v1142_v19 }
0x24d0   :  { %v2676_v58 = vpop.eup %2675 }
0x24d1   :  { %2202 = vrot.lane.b32.xlu1 %v2676_v58, %s2844_s14  ;;  %v2678_v29 = vpop.eup %2677 }
0x24d2   :  { %v2183_v35 = vadd.f32 1.0, %v2678_v29 }
0x24d4   :  { %2679 = vrcp.f32 %v2183_v35 }
0x24d5   :  { %1137 = vrot.lane.b32.xlu1 %v3341_v23, %s2844_s14  ;;  %s2785_s14 = scalar_lea.vmem %s2369_s26, 64 }
0x24d6   :  { %p2786_p11 = scmp.ne.s32.totalorder %s2369_s26, %s2785_s14  ;;  %p2791_p13 = scmp.lt.s32.totalorder %s2785_s14, %s2785_s14 }
0x24d8   :  { %p2792_p0 = por %p2791_p13, %p2790_p12 }
0x24da   :  { %p2793_p1 = pnand %p2792_p0, %p2786_p11 }
0x24e1   :  { %v2680_v41 = vpop.eup %2679 }
0x2535   :  { %v2214_v51 = vpop.permute.xlu0 %2213 }
0x2536   :  { %2216 = vst.msk [vmem:[#allocation12 + $0x2] sm:$0x1] %vm1129_vm10, %v2214_v51 }
0x2543   :  { %v2203_v42 = vpop.permute.xlu1 %2202 }
0x2544   :  { %v2205_v0 = vmul.f32 %v2680_v41, %v2203_v42 }
0x2546   :  { %v2233_v50 = vrot.slane %v2205_v0, 1  ;;  %v2256_v23 = vsel %vm144_vm0, %v2205_v0, %v2242_v6  ;;  %2206 = vst.msk [vmem:[#allocation11 + $0x2] sm:$0x1] %vm1129_vm10, %v2205_v0  ;;  %2208 = vrot.lane.b32.xlu1 %v2205_v0, %s2845_s6 }
0x2547   :  { %v2257_v60 = vsel %vm146_vm1, %v2256_v23, %v2244_v45  ;;  %v1138_v48 = vpop.permute.xlu1 %1137 }
0x2548   :  { %v2258_v52 = vsel %vm148_vm2, %v2257_v60, %v2246_v59  ;;  %1140 = vst.msk [vmem:[#allocation12] sm:$0x1] %vm1129_vm10, %v1138_v48  ;;  %v2241_v15 = vsel %vm156_vm6, %v3569_v11, %v2233_v50 }
0x2549   :  { %v2259_v53 = vsel %vm150_vm3, %v2258_v52, %v2248_v12 }
0x254a   :  { %2217 = vrot.lane.b32.xlu1 %v2199_v37, %s2843_s1  ;;  %v2260_v43 = vsel %vm152_vm4, %v2259_v53, %v2250_v49 }
0x254b   :  { %v2261_v16 = vsel %vm154_vm5, %v2260_v43, %v2252_v31 }
0x254c   :  { %v2262_v2 = vsel %vm156_vm6, %v2261_v16, %v2254_v54 }
0x254d   :  { %v2263_v55 = vsel %vm175_vm8, %v2241_v15, %v2262_v2 }
0x254e   :  { %2473 = vmatmul.mubr.msk.f32.vlgmr.msra.gmra.mxu1 %vm262_vm9, %v2263_v55 }
0x25b8   :  { %v2209_v27 = vpop.permute.xlu1 %2208 }
0x25b9   :  { %2211 = vst.msk [vmem:[#allocation11 + $0x3] sm:$0x1] %vm1129_vm10, %v2209_v27 }
0x25ba   :  { %2796 = shalt.err (!%p2793_p1)
}
0x25bb   :  { %2371 = dma.vmem_to_hbm [thread:$0]  %s2369_s26, 64, %s3666_s12, [#allocation4]  }
0x25bc   :  { %v2218_v36 = vpop.permute.xlu1 %2217  ;;  %s2805_s15 = scalar_lea.vmem %s2379_s28, 64  ;;  %p2810_p3 = scmp.lt.s32.totalorder %s2379_s28, %s2379_s28 }
0x25bd   :  { %2220 = vst.msk [vmem:[#allocation12 + $0x3] sm:$0x1] %vm1129_vm10, %v2218_v36  ;;  %p2806_p2 = scmp.ne.s32.totalorder %s2379_s28, %s2805_s15  ;;  %p2811_p4 = scmp.lt.s32.totalorder %s2805_s15, %s2805_s15 }
0x25bf   :  { %p2812_p5 = por %p2811_p4, %p2810_p3 }
0x25c1   :  { %p2813_p6 = pnand %p2812_p5, %p2806_p2 }
0x25c3   :  { %2816 = shalt.err (!%p2813_p6)
}
0x25c4   :  { %2381 = dma.vmem_to_hbm [thread:$0]  %s2379_s28, 64, %s3667_s13, [#allocation13]   ;;  %v2444_v57 = vld [vmem:[%s3662_s8] ss:$0 sm:$0xff]  ;;  %vm2358_vm12 = vcmask 31744  }
0x260e   :  { %v2348_v62 = vpop.f32.mrf.mxu1 }
0x260f   :  { %v2349_v7 = vadd.f32 %v2444_v57, %v2348_v62 }
0x2610   :  { %v2474_v46 = vpop.f32.mrf.mxu1 }
0x2611   :  { %v2446_v25 = vmul.f32 -1.442695, %v2349_v7 }
0x2613   :  { %2681 = vpow2.f32 %v2446_v25 }
0x2620   :  { %v2682_v1 = vpop.eup %2681 }
0x2621   :  { %v2355_v3 = vadd.f32 1.0, %v2682_v1 }
0x2623   :  { %2683 = vrcp.f32 %v2355_v3 }
0x2630   :  { %v2684_v4 = vpop.eup %2683 }
0x2631   :  { %2359 = vst.msk [vmem:[%s3665_s11] sm:$0xff] %vm2358_vm12, %v2684_v4 }
0x2632   :  { %2831 = dma.done.wait [#allocation4], 64  }
0x2633   :  { %2832 = vsyncadd [#allocation4], 4294967232 }
0x2634   :  { %2833 = dma.done.wait [#allocation13], 64  }
0x2635   :  { %2834 = vsyncadd [#allocation13], 4294967232 }
0x2636   :  { %2390 = vsyncpa [#allocation3], 1 }
0x2637   :  { %2391 = vsyncpa [#allocation6], 1 }
0x2638   :  { %2392 = vsyncpa [#allocation9], 1 }
0x2639   :  { %2393 = vsyncpa [#allocation4], 1 }
0x263a   :  { %2394 = vsyncpa [#allocation13], 1 }

</bundles_post_ra>
